<compile_context>
chip_gen: v5e
topology: v5e:2x2
jax: 0.10.0
libtpu: 0.0.40
codegen_flags: <defaults>
</compile_context>

<pallas_src>
import functools

import numpy as np
import jax
import jax.numpy as jnp
from jax.experimental import pallas as pl
from jax.experimental.pallas import tpu as pltpu


# ----------------------------- hyperparameters ------------------------------
class HP:
    speaker_encoder_type = "gst"
    n_mel_channels = 16
    ref_enc_filters = [4, 8, 8]          # K = 3 conv layers
    ref_enc_gru_size = 16                # == token_embedding_size // 2
    token_embedding_size = 32
    num_heads = 4
    token_num = 10
    speaker_classes = 5


def _conv_out(L, kernel_size=3, stride=2, pad=1):
    return (L - kernel_size + 2 * pad) // stride + 1


# -------------------- one-time structured-weight builders -------------------
def _conv_as_matrix(w, H, W):
    """Matrix M s.t. flat_NCHW(conv_out) = flat_NCHW(in) @ M for Conv2d(3x3,s2,p1).

    w: (Cout, Cin, 3, 3).  Flat order on both sides is channel-first: c*(H*W)+h*W+w.
    """
    Cout, Cin = int(w.shape[0]), int(w.shape[1])
    Ho, Wo = _conv_out(H), _conv_out(W)
    A = np.zeros((H, Ho, 3), np.float32)
    for ho in range(Ho):
        for kh in range(3):
            hi = 2 * ho + kh - 1
            if 0 <= hi < H:
                A[hi, ho, kh] = 1.0
    B = np.zeros((W, Wo, 3), np.float32)
    for wo in range(Wo):
        for kw in range(3):
            wi = 2 * wo + kw - 1
            if 0 <= wi < W:
                B[wi, wo, kw] = 1.0
    M = jnp.einsum("ocij,hpi,wqj->chwopq", w, jnp.asarray(A), jnp.asarray(B))
    return M.reshape(Cin * H * W, Cout * Ho * Wo), (Cout, Ho, Wo)


def _channel_pool(Cout, Ho, Wo):
    """One-hot (Cout*Ho*Wo, Cout) map: flat NCHW feature index -> its channel."""
    P = np.zeros((Cout * Ho * Wo, Cout), np.float32)
    for c in range(Cout):
        P[c * Ho * Wo:(c + 1) * Ho * Wo, c] = 1.0
    return P


def _gru_input_matrix(w_ih, C, Ho, Wo):
    """(C*Ho*Wo, Ho*3H) matrix: flat NCHW conv output -> concatenated per-time-step GRU
    input projections x_t @ W_ih^T (gate order [r|z|n]).  Reproduces PyTorch's
    out.transpose(1,2).view(N, T', C*M') feature ordering (c*Wo + w)."""
    In = C * Wo
    F = C * Ho * Wo
    w_ih_T = w_ih.T                              # (In, 3H)
    cols = []
    for t in range(Ho):
        sel = np.zeros((F, In), np.float32)
        for c in range(C):
            for m in range(Wo):
                sel[c * Ho * Wo + t * Wo + m, c * Wo + m] = 1.0
        cols.append(jnp.asarray(sel) @ w_ih_T)   # (F, 3H)
    return jnp.concatenate(cols, axis=1)         # (F, Ho*3H)


# ------------------------------ fused Pallas kernel --------------------------
def _fused_gst_kernel(
    x_ref,
    w1_ref, gb1_ref, p1_ref, pt1_ref,
    w2_ref, gb2_ref, p2_ref, pt2_ref,
    w3_ref, gb3_ref, p3_ref, pt3_ref,
    wx_ref, whh_ref, bih_ref, bhh_ref,
    wq_ref, ktp_ref, vbd_ref, hsum_ref,
    wc_ref, bc_ref,
    out_ref,
    *, inv_counts, gru_hidden, gru_steps, scale):
    f32 = jnp.float32
    batch = x_ref.shape[0]

    def conv_bn_relu(a, w_ref, gb_ref, p_ref, pt_ref, inv_count):
        w = w_ref[...]
        # Conv2d(3x3, s2, p1) as one structured matmul (conv bias dropped: a per-channel
        # bias before train-mode BatchNorm cancels exactly in the mean-centering).
        y = jnp.dot(a.astype(w.dtype), w, preferred_element_type=f32)        # (N, F)
        # Fused BN statistics: mean and E[y^2] per channel in ONE MXU pass.
        stats = jnp.dot(jnp.concatenate([y, y * y], axis=0), p_ref[...],
                        preferred_element_type=f32)                          # (2N, C)
        mean_c = jnp.sum(stats[:batch], axis=0, keepdims=True) * inv_count   # (1, C)
        var_c = (jnp.sum(stats[batch:], axis=0, keepdims=True) * inv_count
                 - mean_c * mean_c)                                          # biased var
        gb = gb_ref[...]                                                     # (2, C)
        scale_c = gb[0:1, :] * jax.lax.rsqrt(var_c + 1e-5)                   # gamma/sqrt
        shift_c = gb[1:2, :] - mean_c * scale_c                              # beta - m*s
        # Broadcast per-channel scale/shift to feature lanes with one stacked matmul.
        ss = jnp.dot(jnp.concatenate([scale_c, shift_c], axis=0), pt_ref[...],
                     preferred_element_type=f32)                             # (2, F)
        return jnp.maximum(y * ss[0:1, :] + ss[1:2, :], 0.0)

    # ---- ReferenceEncoder conv stack (3 fused conv+BN+ReLU layers) ----------
    a = x_ref[...]
    a = conv_bn_relu(a, w1_ref, gb1_ref, p1_ref, pt1_ref, inv_counts[0])
    a = conv_bn_relu(a, w2_ref, gb2_ref, p2_ref, pt2_ref, inv_counts[1])
    a = conv_bn_relu(a, w3_ref, gb3_ref, p3_ref, pt3_ref, inv_counts[2])     # (N, F3)

    # ---- GRU (h0 = 0): input projections for all steps hoisted to one matmul;
    #      step 0 peeled (h0 = 0 -> hidden projection is just b_hh); rest unrolled.
    H = gru_hidden
    xproj = jnp.dot(a, wx_ref[...], preferred_element_type=f32) + bih_ref[...]
    whh = whh_ref[...]
    bhh = bhh_ref[...]
    xz = xproj[:, 0:3 * H]                                       # t = 0, [r|z|n]
    r = jax.nn.sigmoid(xz[:, 0:H] + bhh[:, 0:H])
    z = jax.nn.sigmoid(xz[:, H:2 * H] + bhh[:, H:2 * H])
    n = jnp.tanh(xz[:, 2 * H:3 * H] + r * bhh[:, 2 * H:3 * H])
    h = (1.0 - z) * n
    for t in range(1, gru_steps):
        xz = xproj[:, t * 3 * H:(t + 1) * 3 * H]
        hz = jnp.dot(h, whh, preferred_element_type=f32) + bhh
        r = jax.nn.sigmoid(xz[:, 0:H] + hz[:, 0:H])
        z = jax.nn.sigmoid(xz[:, H:2 * H] + hz[:, H:2 * H])
        n = jnp.tanh(xz[:, 2 * H:3 * H] + r * hz[:, 2 * H:3 * H])
        h = (1.0 - z) * n + z * h

    # ---- STL multi-head attention: all heads batched with block-diagonal K^T / V.
    q = jnp.dot(h, wq_ref[...], preferred_element_type=f32)                  # (N, E)
    s = jnp.dot(q, ktp_ref[...], preferred_element_type=f32) * scale         # (N, Hd*Tk)
    s = s - jnp.max(s, axis=-1, keepdims=True)          # same shift per head block
    e = jnp.exp(s)
    denom = jnp.dot(e, hsum_ref[...], preferred_element_type=f32)            # per-head sums
    p = e * pl.reciprocal(denom, approx=True)
    style = jnp.dot(p, vbd_ref[...], preferred_element_type=f32)             # (N, E)

    # ---- categorical head: Linear -> softmax --------------------------------
    logits = jnp.dot(style, wc_ref[...], preferred_element_type=f32) + bc_ref[...]
    logits = logits - jnp.max(logits, axis=-1, keepdims=True)
    el = jnp.exp(logits)
    prob = el * pl.reciprocal(jnp.sum(el, axis=-1, keepdims=True), approx=True)

    # ---- single lane-dense store: [style | prob | zero pad] in one (N, 128) slab.
    pad_w = out_ref.shape[1] - style.shape[1] - prob.shape[1]
    pad = jnp.zeros((batch, pad_w), f32)
    out_ref[...] = jnp.concatenate([style, prob, pad], axis=1).astype(out_ref.dtype)


# ----------------------------- parameter setup -------------------------------
def init_params(hp, key):
    keys = iter(jax.random.split(key, 24))
    p = {}

    filters = [1] + list(hp.ref_enc_filters)
    convs = []
    for i in range(len(hp.ref_enc_filters)):
        cin, cout = filters[i], filters[i + 1]
        w = 0.1 * jax.random.normal(next(keys), (cout, cin, 3, 3), jnp.float32)
        b = 0.1 * jax.random.normal(next(keys), (cout,), jnp.float32)
        gamma = jnp.ones((cout,), jnp.float32)
        beta = jnp.zeros((cout,), jnp.float32)
        convs.append((w, b, gamma, beta))
    p["convs"] = convs

    H = hp.ref_enc_gru_size
    out_ch = hp.n_mel_channels
    for _ in range(len(hp.ref_enc_filters)):
        out_ch = _conv_out(out_ch)
    gru_in = hp.ref_enc_filters[-1] * out_ch
    p["gru_w_ih"] = 0.1 * jax.random.normal(next(keys), (3 * H, gru_in), jnp.float32)
    p["gru_w_hh"] = 0.1 * jax.random.normal(next(keys), (3 * H, H), jnp.float32)
    p["gru_b_ih"] = 0.1 * jax.random.normal(next(keys), (3 * H,), jnp.float32)
    p["gru_b_hh"] = 0.1 * jax.random.normal(next(keys), (3 * H,), jnp.float32)

    E = hp.token_embedding_size
    d_q = E // 2
    d_k = E // hp.num_heads
    p["embed"] = 0.5 * jax.random.normal(next(keys), (hp.token_num, d_k), jnp.float32)
    p["wq"] = 0.1 * jax.random.normal(next(keys), (d_q, E), jnp.float32)
    p["wk"] = 0.1 * jax.random.normal(next(keys), (d_k, E), jnp.float32)
    p["wv"] = 0.1 * jax.random.normal(next(keys), (d_k, E), jnp.float32)

    p["cat_w"] = 0.1 * jax.random.normal(next(keys), (E, hp.speaker_classes), jnp.float32)
    p["cat_b"] = 0.1 * jax.random.normal(next(keys), (hp.speaker_classes,), jnp.float32)
    return p


# ---------------- one-time, parameter-only operand preparation ---------------
def prepare_operands(params, hp, T, n_mels):
    """Everything here depends only on weights and static shapes; run once and reuse.
    The jitted forward then contains nothing but the pallas_call."""
    f32 = jnp.float32
    ops = []

    # ---- conv-stack operands: structured conv matrices + BN helpers ---------
    H, W = T, n_mels
    for li, (w, _b, gamma, beta) in enumerate(params["convs"]):
        # conv bias _b dropped: cancels exactly in train-mode BatchNorm centering.
        M, (Cout, Ho, Wo) = _conv_as_matrix(w, H, W)
        if li < 2:
            # the two largest structured matrices dominate DMA bytes -> bf16 storage
            # (f32 accumulation in-kernel).  Flag if bit-parity with f32 is required.
            M = M.astype(jnp.bfloat16)
        P = _channel_pool(Cout, Ho, Wo)                       # (F, C)
        gb = jnp.stack([gamma, beta], axis=0).astype(f32)     # (2, C) [gamma; beta]
        ops += [M, gb, jnp.asarray(P), jnp.asarray(P.T)]
        H, W = Ho, Wo
    C3, Tp, Mp = int(params["convs"][-1][0].shape[0]), H, W   # final (C, T', M')

    # ---- GRU operands (gate-concatenated [r|z|n]) ----------------------------
    Hg = hp.ref_enc_gru_size
    wx_all = _gru_input_matrix(params["gru_w_ih"], C3, Tp, Mp)     # (C3*Tp*Mp, Tp*3H)
    bih_all = jnp.tile(params["gru_b_ih"].reshape(1, 3 * Hg), (1, Tp))
    whh_all = params["gru_w_hh"].T                                 # (H, 3H)
    bhh_all = params["gru_b_hh"].reshape(1, 3 * Hg)
    ops += [wx_all, whh_all, bih_all, bhh_all]

    # ---- STL operands: K/V projections are parameter-only; heads batched via
    #      block-diagonal K^T / V and a block-ones per-head-denominator matrix.
    E = hp.token_embedding_size
    Hd = hp.num_heads
    Tk = hp.token_num
    d_k = E // Hd
    keys_tanh = jnp.tanh(params["embed"])                          # (Tk, d_k)
    kproj = keys_tanh @ params["wk"]                               # (Tk, E)
    vproj = keys_tanh @ params["wv"]                               # (Tk, E)
    ktp_bd = jnp.zeros((E, Hd * Tk), f32)
    vbd = jnp.zeros((Hd * Tk, E), f32)
    for h in range(Hd):
        ktp_bd = ktp_bd.at[h * d_k:(h + 1) * d_k, h * Tk:(h + 1) * Tk].set(
            kproj[:, h * d_k:(h + 1) * d_k].T)
        vbd = vbd.at[h * Tk:(h + 1) * Tk, h * d_k:(h + 1) * d_k].set(
            vproj[:, h * d_k:(h + 1) * d_k])
    hsum = jnp.asarray(np.kron(np.eye(Hd, dtype=np.float32),
                               np.ones((Tk, Tk), np.float32)))     # per-head row sums
    ops += [params["wq"], ktp_bd, vbd, hsum]

    # ---- categorical head ----------------------------------------------------
    ops += [params["cat_w"], params["cat_b"].reshape(1, -1)]
    return tuple(jax.device_put(o) for o in ops)


# --------------------------------- forward -----------------------------------
@functools.partial(jax.jit, static_argnames=("hp",))
def speaker_encoder_forward(ops, inputs, *, hp):
    # TODO(synk): the input_lengths / pack_padded_sequence branch is not implemented
    #             (PyTorch path with input_lengths=None is reproduced).
    N, T, n_mels = inputs.shape
    f32 = jnp.float32
    E = hp.token_embedding_size
    n_classes = hp.speaker_classes

    # static geometry / constants (pure Python, no XLA work)
    H, W = T, n_mels
    inv_counts = []
    for _ in hp.ref_enc_filters:
        H, W = _conv_out(H), _conv_out(W)
        inv_counts.append(1.0 / float(N * H * W))
    Tp = H
    d_k = E // hp.num_heads

    # flat NCHW input (Cin = 1): feature index = t * n_mels + m  (metadata-only reshape)
    x_flat = inputs.reshape(N, T * n_mels).astype(f32)
    operands = (x_flat,) + tuple(ops)

    def full_spec(arr):
        shp = tuple(arr.shape)
        return pl.BlockSpec(shp, lambda i, _s=shp: (0,) * len(_s))

    out_w = 128   # one lane-dense merged output slab: [style(E) | prob(classes) | pad]
    kern = functools.partial(
        _fused_gst_kernel,
        inv_counts=tuple(inv_counts),
        gru_hidden=hp.ref_enc_gru_size, gru_steps=Tp,
        scale=1.0 / (float(d_k) ** 0.5))

    out = pl.pallas_call(
        kern,
        out_shape=jax.ShapeDtypeStruct((N, out_w), f32),
        grid=(1,),
        in_specs=[full_spec(a) for a in operands],
        out_specs=pl.BlockSpec((N, out_w), lambda i: (0, 0)),
        compiler_params=pltpu.CompilerParams(
            dimension_semantics=("arbitrary",),
            vmem_limit_bytes=8 * 1024 * 1024),
    )(*operands)

    style = out[:, :E]
    prob = out[:, E:E + n_classes]
    # GST returns (style_embed.squeeze(0), softmax(Linear(style_embed.squeeze(0))));
    # with N > 1 the squeeze(0) is a no-op, so shapes are (N, 1, E) / (N, 1, classes).
    return style.reshape(N, 1, E), prob.reshape(N, 1, n_classes)


# ----------------------------------- main -------------------------------------
if __name__ == "__main__":
    hp = HP()
    root = jax.random.PRNGKey(0)
    pkey, xkey = jax.random.split(root)
    params = init_params(hp, pkey)

    # inputs --- [N, Ty/r, n_mels*r]
    N, T = 2, 16
    inputs = jax.random.normal(xkey, (N, T, hp.n_mel_channels), dtype=jnp.float32)

    # One-time, parameter-only preprocessing (hoisted out of the per-call path).
    ops = prepare_operands(params, hp, T, hp.n_mel_channels)

    embedding, cat_prob = speaker_encoder_forward(ops, inputs, hp=hp)
    jax.block_until_ready((embedding, cat_prob))

    assert embedding.shape == (N, 1, hp.token_embedding_size)
    assert cat_prob.shape == (N, 1, hp.speaker_classes)
    assert bool(jnp.all(jnp.isfinite(embedding))) and bool(jnp.all(jnp.isfinite(cat_prob)))
    print("KERNEL_OK")
</pallas_src>

<mosaic_0001>
module attributes {stable_mosaic.version = 11 : i64} {
  func.func @_fused_gst_kernel(%arg0: i32, %arg1: memref<2x256xf32, #tpu.memory_space<vmem>>, %arg2: memref<256x256xbf16, #tpu.memory_space<vmem>>, %arg3: memref<2x4xf32, #tpu.memory_space<vmem>>, %arg4: memref<256x4xf32, #tpu.memory_space<vmem>>, %arg5: memref<4x256xf32, #tpu.memory_space<vmem>>, %arg6: memref<256x128xbf16, #tpu.memory_space<vmem>>, %arg7: memref<2x8xf32, #tpu.memory_space<vmem>>, %arg8: memref<128x8xf32, #tpu.memory_space<vmem>>, %arg9: memref<8x128xf32, #tpu.memory_space<vmem>>, %arg10: memref<128x32xf32, #tpu.memory_space<vmem>>, %arg11: memref<2x8xf32, #tpu.memory_space<vmem>>, %arg12: memref<32x8xf32, #tpu.memory_space<vmem>>, %arg13: memref<8x32xf32, #tpu.memory_space<vmem>>, %arg14: memref<32x96xf32, #tpu.memory_space<vmem>>, %arg15: memref<16x48xf32, #tpu.memory_space<vmem>>, %arg16: memref<1x96xf32, #tpu.memory_space<vmem>>, %arg17: memref<1x48xf32, #tpu.memory_space<vmem>>, %arg18: memref<16x32xf32, #tpu.memory_space<vmem>>, %arg19: memref<32x40xf32, #tpu.memory_space<vmem>>, %arg20: memref<40x32xf32, #tpu.memory_space<vmem>>, %arg21: memref<40x40xf32, #tpu.memory_space<vmem>>, %arg22: memref<32x5xf32, #tpu.memory_space<vmem>>, %arg23: memref<1x5xf32, #tpu.memory_space<vmem>>, %arg24: memref<2x128xf32, #tpu.memory_space<vmem>>) attributes {dimension_semantics = [#tpu.dimension_semantics<arbitrary>], iteration_bounds = array<i64: 1>, scalar_prefetch = 0 : i64, scratch_operands = 0 : i64, tpu.core_type = #tpu.core_type<tc>, window_params = [{pipeline_mode = #tpu.pipeline_mode<synchronous>, transform_indices = @transform_0, window_bounds = array<i64: 2, 256>}, {pipeline_mode = #tpu.pipeline_mode<synchronous>, transform_indices = @transform_1, window_bounds = array<i64: 256, 256>}, {pipeline_mode = #tpu.pipeline_mode<synchronous>, transform_indices = @transform_2, window_bounds = array<i64: 2, 4>}, {pipeline_mode = #tpu.pipeline_mode<synchronous>, transform_indices = @transform_3, window_bounds = array<i64: 256, 4>}, {pipeline_mode = #tpu.pipeline_mode<synchronous>, transform_indices = @transform_4, window_bounds = array<i64: 4, 256>}, {pipeline_mode = #tpu.pipeline_mode<synchronous>, transform_indices = @transform_5, window_bounds = array<i64: 256, 128>}, {pipeline_mode = #tpu.pipeline_mode<synchronous>, transform_indices = @transform_6, window_bounds = array<i64: 2, 8>}, {pipeline_mode = #tpu.pipeline_mode<synchronous>, transform_indices = @transform_7, window_bounds = array<i64: 128, 8>}, {pipeline_mode = #tpu.pipeline_mode<synchronous>, transform_indices = @transform_8, window_bounds = array<i64: 8, 128>}, {pipeline_mode = #tpu.pipeline_mode<synchronous>, transform_indices = @transform_9, window_bounds = array<i64: 128, 32>}, {pipeline_mode = #tpu.pipeline_mode<synchronous>, transform_indices = @transform_10, window_bounds = array<i64: 2, 8>}, {pipeline_mode = #tpu.pipeline_mode<synchronous>, transform_indices = @transform_11, window_bounds = array<i64: 32, 8>}, {pipeline_mode = #tpu.pipeline_mode<synchronous>, transform_indices = @transform_12, window_bounds = array<i64: 8, 32>}, {pipeline_mode = #tpu.pipeline_mode<synchronous>, transform_indices = @transform_13, window_bounds = array<i64: 32, 96>}, {pipeline_mode = #tpu.pipeline_mode<synchronous>, transform_indices = @transform_14, window_bounds = array<i64: 16, 48>}, {pipeline_mode = #tpu.pipeline_mode<synchronous>, transform_indices = @transform_15, window_bounds = array<i64: 1, 96>}, {pipeline_mode = #tpu.pipeline_mode<synchronous>, transform_indices = @transform_16, window_bounds = array<i64: 1, 48>}, {pipeline_mode = #tpu.pipeline_mode<synchronous>, transform_indices = @transform_17, window_bounds = array<i64: 16, 32>}, {pipeline_mode = #tpu.pipeline_mode<synchronous>, transform_indices = @transform_18, window_bounds = array<i64: 32, 40>}, {pipeline_mode = #tpu.pipeline_mode<synchronous>, transform_indices = @transform_19, window_bounds = array<i64: 40, 32>}, {pipeline_mode = #tpu.pipeline_mode<synchronous>, transform_indices = @transform_20, window_bounds = array<i64: 40, 40>}, {pipeline_mode = #tpu.pipeline_mode<synchronous>, transform_indices = @transform_21, window_bounds = array<i64: 32, 5>}, {pipeline_mode = #tpu.pipeline_mode<synchronous>, transform_indices = @transform_22, window_bounds = array<i64: 1, 5>}, {pipeline_mode = #tpu.pipeline_mode<synchronous>, transform_indices = @transform_23, window_bounds = array<i64: 2, 128>}]} {
    %c0 = arith.constant 0 : index
    %c0_0 = arith.constant 0 : index
    %0 = vector.load %arg1[%c0, %c0_0] : memref<2x256xf32, #tpu.memory_space<vmem>>, vector<2x256xf32>
    %c0_1 = arith.constant 0 : index
    %c0_2 = arith.constant 0 : index
    %1 = vector.load %arg2[%c0_1, %c0_2] : memref<256x256xbf16, #tpu.memory_space<vmem>>, vector<256x256xbf16>
    %2 = arith.truncf %0 : vector<2x256xf32> to vector<2x256xbf16>
    %cst = arith.constant dense<0.000000e+00> : vector<2x256xf32>
    %3 = tpu.matmul %2, %1, %cst {dimension_numbers = #tpu.dot_dimension_numbers<[1], [0], [0], [1], [0, 0, 1, 1], [], []>} : vector<2x256xbf16>, vector<256x256xbf16>, vector<2x256xf32> -> vector<2x256xf32>
    %4 = arith.mulf %3, %3 : vector<2x256xf32>
    %5 = tpu.concatenate %3, %4 in 0 : vector<2x256xf32>, vector<2x256xf32> -> vector<4x256xf32>
    %c0_3 = arith.constant 0 : index
    %c0_4 = arith.constant 0 : index
    %6 = vector.load %arg4[%c0_3, %c0_4] : memref<256x4xf32, #tpu.memory_space<vmem>>, vector<256x4xf32>
    %cst_5 = arith.constant dense<0.000000e+00> : vector<4x4xf32>
    %7 = tpu.matmul %5, %6, %cst_5 {dimension_numbers = #tpu.dot_dimension_numbers<[1], [0], [0], [1], [0, 0, 1, 1], [], []>} : vector<4x256xf32>, vector<256x4xf32>, vector<4x4xf32> -> vector<4x4xf32>
    %8 = vector.extract_strided_slice %7 {offsets = [0, 0], sizes = [2, 4], strides = [1, 1]} : vector<4x4xf32> to vector<2x4xf32>
    %cst_6 = arith.constant dense<0.000000e+00> : vector<4xf32>
    %9 = vector.multi_reduction <add>, %8, %cst_6 [0] : vector<2x4xf32> to vector<4xf32>
    %10 = vector.shape_cast %9 : vector<4xf32> to vector<1x4xf32>
    %cst_7 = arith.constant 7.812500e-03 : f32
    %11 = vector.broadcast %cst_7 : f32 to vector<1x4xf32>
    %12 = arith.mulf %10, %11 : vector<1x4xf32>
    %13 = vector.extract_strided_slice %7 {offsets = [2, 0], sizes = [2, 4], strides = [1, 1]} : vector<4x4xf32> to vector<2x4xf32>
    %cst_8 = arith.constant dense<0.000000e+00> : vector<4xf32>
    %14 = vector.multi_reduction <add>, %13, %cst_8 [0] : vector<2x4xf32> to vector<4xf32>
    %15 = vector.shape_cast %14 : vector<4xf32> to vector<1x4xf32>
    %cst_9 = arith.constant 7.812500e-03 : f32
    %16 = vector.broadcast %cst_9 : f32 to vector<1x4xf32>
    %17 = arith.mulf %15, %16 : vector<1x4xf32>
    %18 = arith.mulf %12, %12 : vector<1x4xf32>
    %19 = arith.subf %17, %18 : vector<1x4xf32>
    %c0_10 = arith.constant 0 : index
    %c0_11 = arith.constant 0 : index
    %20 = vector.load %arg3[%c0_10, %c0_11] : memref<2x4xf32, #tpu.memory_space<vmem>>, vector<2x4xf32>
    %21 = vector.extract_strided_slice %20 {offsets = [0, 0], sizes = [1, 4], strides = [1, 1]} : vector<2x4xf32> to vector<1x4xf32>
    %cst_12 = arith.constant 9.99999974E-6 : f32
    %22 = vector.broadcast %cst_12 : f32 to vector<1x4xf32>
    %23 = arith.addf %19, %22 : vector<1x4xf32>
    %24 = math.rsqrt %23 : vector<1x4xf32>
    %25 = arith.mulf %21, %24 : vector<1x4xf32>
    %26 = vector.extract_strided_slice %20 {offsets = [1, 0], sizes = [1, 4], strides = [1, 1]} : vector<2x4xf32> to vector<1x4xf32>
    %27 = arith.mulf %12, %25 : vector<1x4xf32>
    %28 = arith.subf %26, %27 : vector<1x4xf32>
    %29 = tpu.concatenate %25, %28 in 0 : vector<1x4xf32>, vector<1x4xf32> -> vector<2x4xf32>
    %c0_13 = arith.constant 0 : index
    %c0_14 = arith.constant 0 : index
    %30 = vector.load %arg5[%c0_13, %c0_14] : memref<4x256xf32, #tpu.memory_space<vmem>>, vector<4x256xf32>
    %cst_15 = arith.constant dense<0.000000e+00> : vector<2x256xf32>
    %31 = tpu.matmul %29, %30, %cst_15 {dimension_numbers = #tpu.dot_dimension_numbers<[1], [0], [0], [1], [0, 0, 1, 1], [], []>} : vector<2x4xf32>, vector<4x256xf32>, vector<2x256xf32> -> vector<2x256xf32>
    %32 = vector.extract_strided_slice %31 {offsets = [0, 0], sizes = [1, 256], strides = [1, 1]} : vector<2x256xf32> to vector<1x256xf32>
    %33 = vector.broadcast %32 : vector<1x256xf32> to vector<2x256xf32>
    %34 = arith.mulf %3, %33 : vector<2x256xf32>
    %35 = vector.extract_strided_slice %31 {offsets = [1, 0], sizes = [1, 256], strides = [1, 1]} : vector<2x256xf32> to vector<1x256xf32>
    %36 = vector.broadcast %35 : vector<1x256xf32> to vector<2x256xf32>
    %37 = arith.addf %34, %36 : vector<2x256xf32>
    %cst_16 = arith.constant 0.000000e+00 : f32
    %38 = vector.broadcast %cst_16 : f32 to vector<2x256xf32>
    %39 = arith.maximumf %37, %38 : vector<2x256xf32>
    %c0_17 = arith.constant 0 : index
    %c0_18 = arith.constant 0 : index
    %40 = vector.load %arg6[%c0_17, %c0_18] : memref<256x128xbf16, #tpu.memory_space<vmem>>, vector<256x128xbf16>
    %41 = arith.truncf %39 : vector<2x256xf32> to vector<2x256xbf16>
    %cst_19 = arith.constant dense<0.000000e+00> : vector<2x128xf32>
    %42 = tpu.matmul %41, %40, %cst_19 {dimension_numbers = #tpu.dot_dimension_numbers<[1], [0], [0], [1], [0, 0, 1, 1], [], []>} : vector<2x256xbf16>, vector<256x128xbf16>, vector<2x128xf32> -> vector<2x128xf32>
    %43 = arith.mulf %42, %42 : vector<2x128xf32>
    %44 = tpu.concatenate %42, %43 in 0 : vector<2x128xf32>, vector<2x128xf32> -> vector<4x128xf32>
    %c0_20 = arith.constant 0 : index
    %c0_21 = arith.constant 0 : index
    %45 = vector.load %arg8[%c0_20, %c0_21] : memref<128x8xf32, #tpu.memory_space<vmem>>, vector<128x8xf32>
    %cst_22 = arith.constant dense<0.000000e+00> : vector<4x8xf32>
    %46 = tpu.matmul %44, %45, %cst_22 {dimension_numbers = #tpu.dot_dimension_numbers<[1], [0], [0], [1], [0, 0, 1, 1], [], []>} : vector<4x128xf32>, vector<128x8xf32>, vector<4x8xf32> -> vector<4x8xf32>
    %47 = vector.extract_strided_slice %46 {offsets = [0, 0], sizes = [2, 8], strides = [1, 1]} : vector<4x8xf32> to vector<2x8xf32>
    %cst_23 = arith.constant dense<0.000000e+00> : vector<8xf32>
    %48 = vector.multi_reduction <add>, %47, %cst_23 [0] : vector<2x8xf32> to vector<8xf32>
    %49 = vector.shape_cast %48 : vector<8xf32> to vector<1x8xf32>
    %cst_24 = arith.constant 3.125000e-02 : f32
    %50 = vector.broadcast %cst_24 : f32 to vector<1x8xf32>
    %51 = arith.mulf %49, %50 : vector<1x8xf32>
    %52 = vector.extract_strided_slice %46 {offsets = [2, 0], sizes = [2, 8], strides = [1, 1]} : vector<4x8xf32> to vector<2x8xf32>
    %cst_25 = arith.constant dense<0.000000e+00> : vector<8xf32>
    %53 = vector.multi_reduction <add>, %52, %cst_25 [0] : vector<2x8xf32> to vector<8xf32>
    %54 = vector.shape_cast %53 : vector<8xf32> to vector<1x8xf32>
    %cst_26 = arith.constant 3.125000e-02 : f32
    %55 = vector.broadcast %cst_26 : f32 to vector<1x8xf32>
    %56 = arith.mulf %54, %55 : vector<1x8xf32>
    %57 = arith.mulf %51, %51 : vector<1x8xf32>
    %58 = arith.subf %56, %57 : vector<1x8xf32>
    %c0_27 = arith.constant 0 : index
    %c0_28 = arith.constant 0 : index
    %59 = vector.load %arg7[%c0_27, %c0_28] : memref<2x8xf32, #tpu.memory_space<vmem>>, vector<2x8xf32>
    %60 = vector.extract_strided_slice %59 {offsets = [0, 0], sizes = [1, 8], strides = [1, 1]} : vector<2x8xf32> to vector<1x8xf32>
    %cst_29 = arith.constant 9.99999974E-6 : f32
    %61 = vector.broadcast %cst_29 : f32 to vector<1x8xf32>
    %62 = arith.addf %58, %61 : vector<1x8xf32>
    %63 = math.rsqrt %62 : vector<1x8xf32>
    %64 = arith.mulf %60, %63 : vector<1x8xf32>
    %65 = vector.extract_strided_slice %59 {offsets = [1, 0], sizes = [1, 8], strides = [1, 1]} : vector<2x8xf32> to vector<1x8xf32>
    %66 = arith.mulf %51, %64 : vector<1x8xf32>
    %67 = arith.subf %65, %66 : vector<1x8xf32>
    %68 = tpu.concatenate %64, %67 in 0 : vector<1x8xf32>, vector<1x8xf32> -> vector<2x8xf32>
    %c0_30 = arith.constant 0 : index
    %c0_31 = arith.constant 0 : index
    %69 = vector.load %arg9[%c0_30, %c0_31] : memref<8x128xf32, #tpu.memory_space<vmem>>, vector<8x128xf32>
    %cst_32 = arith.constant dense<0.000000e+00> : vector<2x128xf32>
    %70 = tpu.matmul %68, %69, %cst_32 {dimension_numbers = #tpu.dot_dimension_numbers<[1], [0], [0], [1], [0, 0, 1, 1], [], []>} : vector<2x8xf32>, vector<8x128xf32>, vector<2x128xf32> -> vector<2x128xf32>
    %71 = vector.extract_strided_slice %70 {offsets = [0, 0], sizes = [1, 128], strides = [1, 1]} : vector<2x128xf32> to vector<1x128xf32>
    %72 = vector.broadcast %71 : vector<1x128xf32> to vector<2x128xf32>
    %73 = arith.mulf %42, %72 : vector<2x128xf32>
    %74 = vector.extract_strided_slice %70 {offsets = [1, 0], sizes = [1, 128], strides = [1, 1]} : vector<2x128xf32> to vector<1x128xf32>
    %75 = vector.broadcast %74 : vector<1x128xf32> to vector<2x128xf32>
    %76 = arith.addf %73, %75 : vector<2x128xf32>
    %cst_33 = arith.constant 0.000000e+00 : f32
    %77 = vector.broadcast %cst_33 : f32 to vector<2x128xf32>
    %78 = arith.maximumf %76, %77 : vector<2x128xf32>
    %c0_34 = arith.constant 0 : index
    %c0_35 = arith.constant 0 : index
    %79 = vector.load %arg10[%c0_34, %c0_35] : memref<128x32xf32, #tpu.memory_space<vmem>>, vector<128x32xf32>
    %cst_36 = arith.constant dense<0.000000e+00> : vector<2x32xf32>
    %80 = tpu.matmul %78, %79, %cst_36 {dimension_numbers = #tpu.dot_dimension_numbers<[1], [0], [0], [1], [0, 0, 1, 1], [], []>} : vector<2x128xf32>, vector<128x32xf32>, vector<2x32xf32> -> vector<2x32xf32>
    %81 = arith.mulf %80, %80 : vector<2x32xf32>
    %82 = tpu.concatenate %80, %81 in 0 : vector<2x32xf32>, vector<2x32xf32> -> vector<4x32xf32>
    %c0_37 = arith.constant 0 : index
    %c0_38 = arith.constant 0 : index
    %83 = vector.load %arg12[%c0_37, %c0_38] : memref<32x8xf32, #tpu.memory_space<vmem>>, vector<32x8xf32>
    %cst_39 = arith.constant dense<0.000000e+00> : vector<4x8xf32>
    %84 = tpu.matmul %82, %83, %cst_39 {dimension_numbers = #tpu.dot_dimension_numbers<[1], [0], [0], [1], [0, 0, 1, 1], [], []>} : vector<4x32xf32>, vector<32x8xf32>, vector<4x8xf32> -> vector<4x8xf32>
    %85 = vector.extract_strided_slice %84 {offsets = [0, 0], sizes = [2, 8], strides = [1, 1]} : vector<4x8xf32> to vector<2x8xf32>
    %cst_40 = arith.constant dense<0.000000e+00> : vector<8xf32>
    %86 = vector.multi_reduction <add>, %85, %cst_40 [0] : vector<2x8xf32> to vector<8xf32>
    %87 = vector.shape_cast %86 : vector<8xf32> to vector<1x8xf32>
    %cst_41 = arith.constant 1.250000e-01 : f32
    %88 = vector.broadcast %cst_41 : f32 to vector<1x8xf32>
    %89 = arith.mulf %87, %88 : vector<1x8xf32>
    %90 = vector.extract_strided_slice %84 {offsets = [2, 0], sizes = [2, 8], strides = [1, 1]} : vector<4x8xf32> to vector<2x8xf32>
    %cst_42 = arith.constant dense<0.000000e+00> : vector<8xf32>
    %91 = vector.multi_reduction <add>, %90, %cst_42 [0] : vector<2x8xf32> to vector<8xf32>
    %92 = vector.shape_cast %91 : vector<8xf32> to vector<1x8xf32>
    %cst_43 = arith.constant 1.250000e-01 : f32
    %93 = vector.broadcast %cst_43 : f32 to vector<1x8xf32>
    %94 = arith.mulf %92, %93 : vector<1x8xf32>
    %95 = arith.mulf %89, %89 : vector<1x8xf32>
    %96 = arith.subf %94, %95 : vector<1x8xf32>
    %c0_44 = arith.constant 0 : index
    %c0_45 = arith.constant 0 : index
    %97 = vector.load %arg11[%c0_44, %c0_45] : memref<2x8xf32, #tpu.memory_space<vmem>>, vector<2x8xf32>
    %98 = vector.extract_strided_slice %97 {offsets = [0, 0], sizes = [1, 8], strides = [1, 1]} : vector<2x8xf32> to vector<1x8xf32>
    %cst_46 = arith.constant 9.99999974E-6 : f32
    %99 = vector.broadcast %cst_46 : f32 to vector<1x8xf32>
    %100 = arith.addf %96, %99 : vector<1x8xf32>
    %101 = math.rsqrt %100 : vector<1x8xf32>
    %102 = arith.mulf %98, %101 : vector<1x8xf32>
    %103 = vector.extract_strided_slice %97 {offsets = [1, 0], sizes = [1, 8], strides = [1, 1]} : vector<2x8xf32> to vector<1x8xf32>
    %104 = arith.mulf %89, %102 : vector<1x8xf32>
    %105 = arith.subf %103, %104 : vector<1x8xf32>
    %106 = tpu.concatenate %102, %105 in 0 : vector<1x8xf32>, vector<1x8xf32> -> vector<2x8xf32>
    %c0_47 = arith.constant 0 : index
    %c0_48 = arith.constant 0 : index
    %107 = vector.load %arg13[%c0_47, %c0_48] : memref<8x32xf32, #tpu.memory_space<vmem>>, vector<8x32xf32>
    %cst_49 = arith.constant dense<0.000000e+00> : vector<2x32xf32>
    %108 = tpu.matmul %106, %107, %cst_49 {dimension_numbers = #tpu.dot_dimension_numbers<[1], [0], [0], [1], [0, 0, 1, 1], [], []>} : vector<2x8xf32>, vector<8x32xf32>, vector<2x32xf32> -> vector<2x32xf32>
    %109 = vector.extract_strided_slice %108 {offsets = [0, 0], sizes = [1, 32], strides = [1, 1]} : vector<2x32xf32> to vector<1x32xf32>
    %110 = vector.broadcast %109 : vector<1x32xf32> to vector<2x32xf32>
    %111 = arith.mulf %80, %110 : vector<2x32xf32>
    %112 = vector.extract_strided_slice %108 {offsets = [1, 0], sizes = [1, 32], strides = [1, 1]} : vector<2x32xf32> to vector<1x32xf32>
    %113 = vector.broadcast %112 : vector<1x32xf32> to vector<2x32xf32>
    %114 = arith.addf %111, %113 : vector<2x32xf32>
    %cst_50 = arith.constant 0.000000e+00 : f32
    %115 = vector.broadcast %cst_50 : f32 to vector<2x32xf32>
    %116 = arith.maximumf %114, %115 : vector<2x32xf32>
    %c0_51 = arith.constant 0 : index
    %c0_52 = arith.constant 0 : index
    %117 = vector.load %arg14[%c0_51, %c0_52] : memref<32x96xf32, #tpu.memory_space<vmem>>, vector<32x96xf32>
    %cst_53 = arith.constant dense<0.000000e+00> : vector<2x96xf32>
    %118 = tpu.matmul %116, %117, %cst_53 {dimension_numbers = #tpu.dot_dimension_numbers<[1], [0], [0], [1], [0, 0, 1, 1], [], []>} : vector<2x32xf32>, vector<32x96xf32>, vector<2x96xf32> -> vector<2x96xf32>
    %c0_54 = arith.constant 0 : index
    %c0_55 = arith.constant 0 : index
    %119 = vector.load %arg16[%c0_54, %c0_55] : memref<1x96xf32, #tpu.memory_space<vmem>>, vector<1x96xf32>
    %120 = vector.broadcast %119 : vector<1x96xf32> to vector<2x96xf32>
    %121 = arith.addf %118, %120 : vector<2x96xf32>
    %c0_56 = arith.constant 0 : index
    %c0_57 = arith.constant 0 : index
    %122 = vector.load %arg15[%c0_56, %c0_57] : memref<16x48xf32, #tpu.memory_space<vmem>>, vector<16x48xf32>
    %c0_58 = arith.constant 0 : index
    %c0_59 = arith.constant 0 : index
    %123 = vector.load %arg17[%c0_58, %c0_59] : memref<1x48xf32, #tpu.memory_space<vmem>>, vector<1x48xf32>
    %124 = vector.extract_strided_slice %121 {offsets = [0, 0], sizes = [2, 48], strides = [1, 1]} : vector<2x96xf32> to vector<2x48xf32>
    %125 = vector.extract_strided_slice %124 {offsets = [0, 0], sizes = [2, 16], strides = [1, 1]} : vector<2x48xf32> to vector<2x16xf32>
    %126 = vector.extract_strided_slice %123 {offsets = [0, 0], sizes = [1, 16], strides = [1, 1]} : vector<1x48xf32> to vector<1x16xf32>
    %127 = vector.broadcast %126 : vector<1x16xf32> to vector<2x16xf32>
    %128 = arith.addf %125, %127 : vector<2x16xf32>
    %129 = arith.negf %128 : vector<2x16xf32>
    %130 = math.exp %129 : vector<2x16xf32>
    %cst_60 = arith.constant 1.000000e+00 : f32
    %131 = vector.broadcast %cst_60 : f32 to vector<2x16xf32>
    %132 = arith.addf %131, %130 : vector<2x16xf32>
    %133 = arith.divf %131, %132 : vector<2x16xf32>
    %134 = vector.extract_strided_slice %124 {offsets = [0, 16], sizes = [2, 16], strides = [1, 1]} : vector<2x48xf32> to vector<2x16xf32>
    %135 = vector.extract_strided_slice %123 {offsets = [0, 16], sizes = [1, 16], strides = [1, 1]} : vector<1x48xf32> to vector<1x16xf32>
    %136 = vector.broadcast %135 : vector<1x16xf32> to vector<2x16xf32>
    %137 = arith.addf %134, %136 : vector<2x16xf32>
    %138 = arith.negf %137 : vector<2x16xf32>
    %139 = math.exp %138 : vector<2x16xf32>
    %cst_61 = arith.constant 1.000000e+00 : f32
    %140 = vector.broadcast %cst_61 : f32 to vector<2x16xf32>
    %141 = arith.addf %140, %139 : vector<2x16xf32>
    %142 = arith.divf %140, %141 : vector<2x16xf32>
    %143 = vector.extract_strided_slice %124 {offsets = [0, 32], sizes = [2, 16], strides = [1, 1]} : vector<2x48xf32> to vector<2x16xf32>
    %144 = vector.extract_strided_slice %123 {offsets = [0, 32], sizes = [1, 16], strides = [1, 1]} : vector<1x48xf32> to vector<1x16xf32>
    %145 = vector.broadcast %144 : vector<1x16xf32> to vector<2x16xf32>
    %146 = arith.mulf %133, %145 : vector<2x16xf32>
    %147 = arith.addf %143, %146 : vector<2x16xf32>
    %148 = math.tanh %147 : vector<2x16xf32>
    %cst_62 = arith.constant 1.000000e+00 : f32
    %149 = vector.broadcast %cst_62 : f32 to vector<2x16xf32>
    %150 = arith.subf %149, %142 : vector<2x16xf32>
    %151 = arith.mulf %150, %148 : vector<2x16xf32>
    %152 = vector.extract_strided_slice %121 {offsets = [0, 48], sizes = [2, 48], strides = [1, 1]} : vector<2x96xf32> to vector<2x48xf32>
    %cst_63 = arith.constant dense<0.000000e+00> : vector<2x48xf32>
    %153 = tpu.matmul %151, %122, %cst_63 {dimension_numbers = #tpu.dot_dimension_numbers<[1], [0], [0], [1], [0, 0, 1, 1], [], []>} : vector<2x16xf32>, vector<16x48xf32>, vector<2x48xf32> -> vector<2x48xf32>
    %154 = vector.broadcast %123 : vector<1x48xf32> to vector<2x48xf32>
    %155 = arith.addf %153, %154 : vector<2x48xf32>
    %156 = vector.extract_strided_slice %152 {offsets = [0, 0], sizes = [2, 16], strides = [1, 1]} : vector<2x48xf32> to vector<2x16xf32>
    %157 = vector.extract_strided_slice %155 {offsets = [0, 0], sizes = [2, 16], strides = [1, 1]} : vector<2x48xf32> to vector<2x16xf32>
    %158 = arith.addf %156, %157 : vector<2x16xf32>
    %159 = arith.negf %158 : vector<2x16xf32>
    %160 = math.exp %159 : vector<2x16xf32>
    %cst_64 = arith.constant 1.000000e+00 : f32
    %161 = vector.broadcast %cst_64 : f32 to vector<2x16xf32>
    %162 = arith.addf %161, %160 : vector<2x16xf32>
    %163 = arith.divf %161, %162 : vector<2x16xf32>
    %164 = vector.extract_strided_slice %152 {offsets = [0, 16], sizes = [2, 16], strides = [1, 1]} : vector<2x48xf32> to vector<2x16xf32>
    %165 = vector.extract_strided_slice %155 {offsets = [0, 16], sizes = [2, 16], strides = [1, 1]} : vector<2x48xf32> to vector<2x16xf32>
    %166 = arith.addf %164, %165 : vector<2x16xf32>
    %167 = arith.negf %166 : vector<2x16xf32>
    %168 = math.exp %167 : vector<2x16xf32>
    %cst_65 = arith.constant 1.000000e+00 : f32
    %169 = vector.broadcast %cst_65 : f32 to vector<2x16xf32>
    %170 = arith.addf %169, %168 : vector<2x16xf32>
    %171 = arith.divf %169, %170 : vector<2x16xf32>
    %172 = vector.extract_strided_slice %152 {offsets = [0, 32], sizes = [2, 16], strides = [1, 1]} : vector<2x48xf32> to vector<2x16xf32>
    %173 = vector.extract_strided_slice %155 {offsets = [0, 32], sizes = [2, 16], strides = [1, 1]} : vector<2x48xf32> to vector<2x16xf32>
    %174 = arith.mulf %163, %173 : vector<2x16xf32>
    %175 = arith.addf %172, %174 : vector<2x16xf32>
    %176 = math.tanh %175 : vector<2x16xf32>
    %cst_66 = arith.constant 1.000000e+00 : f32
    %177 = vector.broadcast %cst_66 : f32 to vector<2x16xf32>
    %178 = arith.subf %177, %171 : vector<2x16xf32>
    %179 = arith.mulf %178, %176 : vector<2x16xf32>
    %180 = arith.mulf %171, %151 : vector<2x16xf32>
    %181 = arith.addf %179, %180 : vector<2x16xf32>
    %c0_67 = arith.constant 0 : index
    %c0_68 = arith.constant 0 : index
    %182 = vector.load %arg18[%c0_67, %c0_68] : memref<16x32xf32, #tpu.memory_space<vmem>>, vector<16x32xf32>
    %cst_69 = arith.constant dense<0.000000e+00> : vector<2x32xf32>
    %183 = tpu.matmul %181, %182, %cst_69 {dimension_numbers = #tpu.dot_dimension_numbers<[1], [0], [0], [1], [0, 0, 1, 1], [], []>} : vector<2x16xf32>, vector<16x32xf32>, vector<2x32xf32> -> vector<2x32xf32>
    %c0_70 = arith.constant 0 : index
    %c0_71 = arith.constant 0 : index
    %184 = vector.load %arg19[%c0_70, %c0_71] : memref<32x40xf32, #tpu.memory_space<vmem>>, vector<32x40xf32>
    %cst_72 = arith.constant dense<0.000000e+00> : vector<2x40xf32>
    %185 = tpu.matmul %183, %184, %cst_72 {dimension_numbers = #tpu.dot_dimension_numbers<[1], [0], [0], [1], [0, 0, 1, 1], [], []>} : vector<2x32xf32>, vector<32x40xf32>, vector<2x40xf32> -> vector<2x40xf32>
    %cst_73 = arith.constant 0.353553385 : f32
    %186 = vector.broadcast %cst_73 : f32 to vector<2x40xf32>
    %187 = arith.mulf %185, %186 : vector<2x40xf32>
    %cst_74 = arith.constant dense<0xFF800000> : vector<2xf32>
    %188 = vector.multi_reduction <maximumf>, %187, %cst_74 [1] : vector<2x40xf32> to vector<2xf32>
    %189 = vector.shape_cast %188 : vector<2xf32> to vector<2x1xf32>
    %190 = vector.broadcast %189 : vector<2x1xf32> to vector<2x40xf32>
    %191 = arith.subf %187, %190 : vector<2x40xf32>
    %192 = math.exp %191 : vector<2x40xf32>
    %c0_75 = arith.constant 0 : index
    %c0_76 = arith.constant 0 : index
    %193 = vector.load %arg21[%c0_75, %c0_76] : memref<40x40xf32, #tpu.memory_space<vmem>>, vector<40x40xf32>
    %cst_77 = arith.constant dense<0.000000e+00> : vector<2x40xf32>
    %194 = tpu.matmul %192, %193, %cst_77 {dimension_numbers = #tpu.dot_dimension_numbers<[1], [0], [0], [1], [0, 0, 1, 1], [], []>} : vector<2x40xf32>, vector<40x40xf32>, vector<2x40xf32> -> vector<2x40xf32>
    %195 = tpu.reciprocal %194 {approx = true} : vector<2x40xf32> -> vector<2x40xf32>
    %196 = arith.mulf %192, %195 : vector<2x40xf32>
    %c0_78 = arith.constant 0 : index
    %c0_79 = arith.constant 0 : index
    %197 = vector.load %arg20[%c0_78, %c0_79] : memref<40x32xf32, #tpu.memory_space<vmem>>, vector<40x32xf32>
    %cst_80 = arith.constant dense<0.000000e+00> : vector<2x32xf32>
    %198 = tpu.matmul %196, %197, %cst_80 {dimension_numbers = #tpu.dot_dimension_numbers<[1], [0], [0], [1], [0, 0, 1, 1], [], []>} : vector<2x40xf32>, vector<40x32xf32>, vector<2x32xf32> -> vector<2x32xf32>
    %c0_81 = arith.constant 0 : index
    %c0_82 = arith.constant 0 : index
    %199 = vector.load %arg22[%c0_81, %c0_82] : memref<32x5xf32, #tpu.memory_space<vmem>>, vector<32x5xf32>
    %cst_83 = arith.constant dense<0.000000e+00> : vector<2x5xf32>
    %200 = tpu.matmul %198, %199, %cst_83 {dimension_numbers = #tpu.dot_dimension_numbers<[1], [0], [0], [1], [0, 0, 1, 1], [], []>} : vector<2x32xf32>, vector<32x5xf32>, vector<2x5xf32> -> vector<2x5xf32>
    %c0_84 = arith.constant 0 : index
    %c0_85 = arith.constant 0 : index
    %201 = vector.load %arg23[%c0_84, %c0_85] : memref<1x5xf32, #tpu.memory_space<vmem>>, vector<1x5xf32>
    %202 = vector.broadcast %201 : vector<1x5xf32> to vector<2x5xf32>
    %203 = arith.addf %200, %202 : vector<2x5xf32>
    %cst_86 = arith.constant dense<0xFF800000> : vector<2xf32>
    %204 = vector.multi_reduction <maximumf>, %203, %cst_86 [1] : vector<2x5xf32> to vector<2xf32>
    %205 = vector.shape_cast %204 : vector<2xf32> to vector<2x1xf32>
    %206 = vector.broadcast %205 : vector<2x1xf32> to vector<2x5xf32>
    %207 = arith.subf %203, %206 : vector<2x5xf32>
    %208 = math.exp %207 : vector<2x5xf32>
    %cst_87 = arith.constant dense<0.000000e+00> : vector<2xf32>
    %209 = vector.multi_reduction <add>, %208, %cst_87 [1] : vector<2x5xf32> to vector<2xf32>
    %210 = vector.shape_cast %209 : vector<2xf32> to vector<2x1xf32>
    %211 = tpu.reciprocal %210 {approx = true} : vector<2x1xf32> -> vector<2x1xf32>
    %212 = vector.broadcast %211 : vector<2x1xf32> to vector<2x5xf32>
    %213 = arith.mulf %208, %212 : vector<2x5xf32>
    %cst_88 = arith.constant 0.000000e+00 : f32
    %214 = vector.broadcast %cst_88 : f32 to vector<2x91xf32>
    %215 = tpu.concatenate %198, %213, %214 in 1 : vector<2x32xf32>, vector<2x5xf32>, vector<2x91xf32> -> vector<2x128xf32>
    %c0_89 = arith.constant 0 : index
    %c0_90 = arith.constant 0 : index
    %216 = vector.load %arg24[%c0_89, %c0_90] : memref<2x128xf32, #tpu.memory_space<vmem>>, vector<2x128xf32>
    tpu.vector_store %arg24[%c0_89, %c0_90], %215 {strides = array<i32>} : memref<2x128xf32, #tpu.memory_space<vmem>>, vector<2x128xf32>,
    return
  }
  func.func @transform_0(%arg0: i32) -> (i32, i32) {
    %c0_i32 = arith.constant 0 : i32
    %c0_i32_0 = arith.constant 0 : i32
    %c0_i32_1 = arith.constant 0 : i32
    return %c0_i32, %c0_i32_0 : i32, i32
  }
  func.func @transform_1(%arg0: i32) -> (i32, i32) {
    %c0_i32 = arith.constant 0 : i32
    %c0_i32_0 = arith.constant 0 : i32
    %c0_i32_1 = arith.constant 0 : i32
    return %c0_i32, %c0_i32_0 : i32, i32
  }
  func.func @transform_2(%arg0: i32) -> (i32, i32) {
    %c0_i32 = arith.constant 0 : i32
    %c0_i32_0 = arith.constant 0 : i32
    %c0_i32_1 = arith.constant 0 : i32
    return %c0_i32, %c0_i32_0 : i32, i32
  }
  func.func @transform_3(%arg0: i32) -> (i32, i32) {
    %c0_i32 = arith.constant 0 : i32
    %c0_i32_0 = arith.constant 0 : i32
    %c0_i32_1 = arith.constant 0 : i32
    return %c0_i32, %c0_i32_0 : i32, i32
  }
  func.func @transform_4(%arg0: i32) -> (i32, i32) {
    %c0_i32 = arith.constant 0 : i32
    %c0_i32_0 = arith.constant 0 : i32
    %c0_i32_1 = arith.constant 0 : i32
    return %c0_i32, %c0_i32_0 : i32, i32
  }
  func.func @transform_5(%arg0: i32) -> (i32, i32) {
    %c0_i32 = arith.constant 0 : i32
    %c0_i32_0 = arith.constant 0 : i32
    %c0_i32_1 = arith.constant 0 : i32
    return %c0_i32, %c0_i32_0 : i32, i32
  }
  func.func @transform_6(%arg0: i32) -> (i32, i32) {
    %c0_i32 = arith.constant 0 : i32
    %c0_i32_0 = arith.constant 0 : i32
    %c0_i32_1 = arith.constant 0 : i32
    return %c0_i32, %c0_i32_0 : i32, i32
  }
  func.func @transform_7(%arg0: i32) -> (i32, i32) {
    %c0_i32 = arith.constant 0 : i32
    %c0_i32_0 = arith.constant 0 : i32
    %c0_i32_1 = arith.constant 0 : i32
    return %c0_i32, %c0_i32_0 : i32, i32
  }
  func.func @transform_8(%arg0: i32) -> (i32, i32) {
    %c0_i32 = arith.constant 0 : i32
    %c0_i32_0 = arith.constant 0 : i32
    %c0_i32_1 = arith.constant 0 : i32
    return %c0_i32, %c0_i32_0 : i32, i32
  }
  func.func @transform_9(%arg0: i32) -> (i32, i32) {
    %c0_i32 = arith.constant 0 : i32
    %c0_i32_0 = arith.constant 0 : i32
    %c0_i32_1 = arith.constant 0 : i32
    return %c0_i32, %c0_i32_0 : i32, i32
  }
  func.func @transform_10(%arg0: i32) -> (i32, i32) {
    %c0_i32 = arith.constant 0 : i32
    %c0_i32_0 = arith.constant 0 : i32
    %c0_i32_1 = arith.constant 0 : i32
    return %c0_i32, %c0_i32_0 : i32, i32
  }
  func.func @transform_11(%arg0: i32) -> (i32, i32) {
    %c0_i32 = arith.constant 0 : i32
    %c0_i32_0 = arith.constant 0 : i32
    %c0_i32_1 = arith.constant 0 : i32
    return %c0_i32, %c0_i32_0 : i32, i32
  }
  func.func @transform_12(%arg0: i32) -> (i32, i32) {
    %c0_i32 = arith.constant 0 : i32
    %c0_i32_0 = arith.constant 0 : i32
    %c0_i32_1 = arith.constant 0 : i32
    return %c0_i32, %c0_i32_0 : i32, i32
  }
  func.func @transform_13(%arg0: i32) -> (i32, i32) {
    %c0_i32 = arith.constant 0 : i32
    %c0_i32_0 = arith.constant 0 : i32
    %c0_i32_1 = arith.constant 0 : i32
    return %c0_i32, %c0_i32_0 : i32, i32
  }
  func.func @transform_14(%arg0: i32) -> (i32, i32) {
    %c0_i32 = arith.constant 0 : i32
    %c0_i32_0 = arith.constant 0 : i32
    %c0_i32_1 = arith.constant 0 : i32
    return %c0_i32, %c0_i32_0 : i32, i32
  }
  func.func @transform_15(%arg0: i32) -> (i32, i32) {
    %c0_i32 = arith.constant 0 : i32
    %c0_i32_0 = arith.constant 0 : i32
    %c0_i32_1 = arith.constant 0 : i32
    return %c0_i32, %c0_i32_0 : i32, i32
  }
  func.func @transform_16(%arg0: i32) -> (i32, i32) {
    %c0_i32 = arith.constant 0 : i32
    %c0_i32_0 = arith.constant 0 : i32
    %c0_i32_1 = arith.constant 0 : i32
    return %c0_i32, %c0_i32_0 : i32, i32
  }
  func.func @transform_17(%arg0: i32) -> (i32, i32) {
    %c0_i32 = arith.constant 0 : i32
    %c0_i32_0 = arith.constant 0 : i32
    %c0_i32_1 = arith.constant 0 : i32
    return %c0_i32, %c0_i32_0 : i32, i32
  }
  func.func @transform_18(%arg0: i32) -> (i32, i32) {
    %c0_i32 = arith.constant 0 : i32
    %c0_i32_0 = arith.constant 0 : i32
    %c0_i32_1 = arith.constant 0 : i32
    return %c0_i32, %c0_i32_0 : i32, i32
  }
  func.func @transform_19(%arg0: i32) -> (i32, i32) {
    %c0_i32 = arith.constant 0 : i32
    %c0_i32_0 = arith.constant 0 : i32
    %c0_i32_1 = arith.constant 0 : i32
    return %c0_i32, %c0_i32_0 : i32, i32
  }
  func.func @transform_20(%arg0: i32) -> (i32, i32) {
    %c0_i32 = arith.constant 0 : i32
    %c0_i32_0 = arith.constant 0 : i32
    %c0_i32_1 = arith.constant 0 : i32
    return %c0_i32, %c0_i32_0 : i32, i32
  }
  func.func @transform_21(%arg0: i32) -> (i32, i32) {
    %c0_i32 = arith.constant 0 : i32
    %c0_i32_0 = arith.constant 0 : i32
    %c0_i32_1 = arith.constant 0 : i32
    return %c0_i32, %c0_i32_0 : i32, i32
  }
  func.func @transform_22(%arg0: i32) -> (i32, i32) {
    %c0_i32 = arith.constant 0 : i32
    %c0_i32_0 = arith.constant 0 : i32
    %c0_i32_1 = arith.constant 0 : i32
    return %c0_i32, %c0_i32_0 : i32, i32
  }
  func.func @transform_23(%arg0: i32) -> (i32, i32) {
    %c0_i32 = arith.constant 0 : i32
    %c0_i32_0 = arith.constant 0 : i32
    %c0_i32_1 = arith.constant 0 : i32
    return %c0_i32, %c0_i32_0 : i32, i32
  }
}

</mosaic_0001>

<bundles_post_ra>
// kernel: speaker_encoder_forward.1
= control target key start
LH: loop header
LB: loop body
LE: loop exit
PB: predicated region body
PF: predicated region fallthrough
CT: control target
= control target key end

     0   :  { %vm335_vm0 = vcmask 1041408   ;;  %vm461_vm1 = vcmask 1043456   ;;  %vm410_vm2 = vcmask 25600   ;;  %vm450_vm6 = vcmask 1040384   ;;  %s2272_s1 = inlined_call_operand.vmem [shape: bf16[256,256], index: 1, kind: input, shape index: {}]   ;;  %s2273_s0 = inlined_call_operand.vmem [shape: f32[2,256], index: 0, kind: input, shape index: {}]   ;;  %s2274_s4 = inlined_call_operand.vmem [shape: f32[4,256], index: 4, kind: input, shape index: {}]   ;;  %s2275_s3 = inlined_call_operand.vmem [shape: f32[256,4], index: 3, kind: input, shape index: {}]   ;;  %s2276_s5 = inlined_call_operand.vmem [shape: bf16[256,128], index: 5, kind: input, shape index: {}]   ;;  %s2277_s2 = inlined_call_operand.vmem [shape: f32[2,4], index: 2, kind: input, shape index: {}]   ;;  %s2278_s7 = inlined_call_operand.vmem [shape: f32[128,8], index: 7, kind: input, shape index: {}]   ;;  %s2279_s8 = inlined_call_operand.vmem [shape: f32[8,128], index: 8, kind: input, shape index: {}]   ;;  %s2280_s9 = inlined_call_operand.vmem [shape: f32[128,32], index: 9, kind: input, shape index: {}]   ;;  %s2281_s6 = inlined_call_operand.vmem [shape: f32[2,8], index: 6, kind: input, shape index: {}]   ;;  %s2282_s11 = inlined_call_operand.vmem [shape: f32[32,8], index: 11, kind: input, shape index: {}]   ;;  %s2283_s12 = inlined_call_operand.vmem [shape: f32[8,32], index: 12, kind: input, shape index: {}]   ;;  %s2284_s10 = inlined_call_operand.vmem [shape: f32[2,8], index: 10, kind: input, shape index: {}]   ;;  %s2285_s16 = inlined_call_operand.vmem [shape: f32[1,48], index: 16, kind: input, shape index: {}]   ;;  %s2286_s15 = inlined_call_operand.vmem [shape: f32[1,96], index: 15, kind: input, shape index: {}]   ;;  %s2287_s13 = inlined_call_operand.vmem [shape: f32[32,96], index: 13, kind: input, shape index: {}]   ;;  %s2288_s14 = inlined_call_operand.vmem [shape: f32[16,48], index: 14, kind: input, shape index: {}]   ;;  %s2289_s17 = inlined_call_operand.vmem [shape: f32[16,32], index: 17, kind: input, shape index: {}]   ;;  %s2290_s18 = inlined_call_operand.vmem [shape: f32[32,40], index: 18, kind: input, shape index: {}]   ;;  %s2291_s20 = inlined_call_operand.vmem [shape: f32[40,40], index: 20, kind: input, shape index: {}]   ;;  %s2292_s19 = inlined_call_operand.vmem [shape: f32[40,32], index: 19, kind: input, shape index: {}]   ;;  %s2293_s21 = inlined_call_operand.vmem [shape: f32[32,5], index: 21, kind: input, shape index: {}]   ;;  %s2294_s22 = inlined_call_operand.vmem [shape: f32[1,5], index: 22, kind: input, shape index: {}]   ;;  %s2295_s23 = inlined_call_operand.vmem [shape: f32[2,128], index: 23, kind: output, shape index: {}]  }
   0x1   :  { %2300 = sst [smem:[#allocation2_spill]] %s2272_s1  ;;  %vm457_vm7 = vcmask 31744   ;;  %vm713_vm8 = vcmask 58368   ;;  %vm755_vm12 = vcmask 64512   ;;  %vm829_vm13 = vcmask 261120  }
   0x2   :  { %2301 = sst [smem:[#allocation3_spill]] %s2273_s0 }
   0x3   :  { %2302 = sst [smem:[#allocation4_spill]] %s2274_s4  ;;  %s1533_s4 = smov 96  }
   0x4   :  { %2303 = sst [smem:[#allocation5_spill]] %s2275_s3 }
   0x5   :  { %2304 = sst [smem:[#allocation6_spill]] %s2276_s5 }
   0x6   :  { %2305 = sst [smem:[#allocation7_spill]] %s2277_s2 }
   0x7   :  { %2306 = sst [smem:[#allocation8_spill]] %s2278_s7 }
   0x8   :  { %2307 = sst [smem:[#allocation9_spill]] %s2279_s8 }
   0x9   :  { %s2308_s24 = sld [smem:[#allocation2_spill]] }
   0xa   :  { %s2309_s3 = sld [smem:[#allocation3_spill]] }
   0xb   :  { %s2310_s7 = sld [smem:[#allocation4_spill]] }
   0xc   :  { %s2311_s28 = sld [smem:[#allocation5_spill]] }
   0xd   :  { %s2312_s2 = sld [smem:[#allocation6_spill]] }
   0xe   :  { %s2314_s29 = sld [smem:[#allocation8_spill]] }
   0xf   :  { %v1300_v0 = vld [vmem:[%s2308_s24 + $0x70] sm:$0xf]  ;;  %v1465_v1 = vld [vmem:[%s2308_s24 + $0x74] sm:$0xf0]  ;;  %v1464_v5 = vld [vmem:[%s2308_s24 + $0x74] sm:$0xf] }
  0x10   :  { %v1364_v2 = vld [vmem:[%s2308_s24 + $0xf0] sm:$0xf]  ;;  %v1301_v3 = vor.u32 %v1465_v1, %v1300_v0  ;;  %v1481_v4 = vld [vmem:[%s2308_s24 + $0xf4] sm:$0xf0]  ;;  %v1302_v6 = vld [vmem:[%s2308_s24 + $0x78] sm:$0xf0] }
  0x11   :  { %v1365_v7 = vor.u32 %v1481_v4, %v1364_v2  ;;  %v1305_v8 = vor.u32 %v1464_v5, %v1302_v6  ;;  %v1480_v9 = vld [vmem:[%s2308_s24 + $0xf4] sm:$0xf]  ;;  %v1366_v10 = vld [vmem:[%s2308_s24 + $0xf8] sm:$0xf0]  ;;  %v1292_v11 = vld [vmem:[%s2308_s24 + $0x60] sm:$0xf] }
  0x12   :  { %275 = vmatpush.bf16.msra.mxu0 %v1301_v3  ;;  %v1369_v12 = vor.u32 %v1480_v9, %v1366_v10  ;;  %v1463_v13 = vld [vmem:[%s2308_s24 + $0x64] sm:$0xf0]  ;;  %v1356_v14 = vld [vmem:[%s2308_s24 + $0xe0] sm:$0xf]  ;;  %v1462_v18 = vld [vmem:[%s2308_s24 + $0x64] sm:$0xf] }
  0x13   :  { %v1479_v15 = vld [vmem:[%s2308_s24 + $0xe4] sm:$0xf0]  ;;  %288 = vmatpush.bf16.msra.mxu1 %v1365_v7  ;;  %301 = vmatpush.bf16.msra.mxu2 %v1305_v8  ;;  %v1293_v16 = vor.u32 %v1463_v13, %v1292_v11  ;;  %v1294_v19 = vld [vmem:[%s2308_s24 + $0x68] sm:$0xf0]  ;;  %v1478_v20 = vld [vmem:[%s2308_s24 + $0xe4] sm:$0xf] }
  0x14   :  { %v1357_v17 = vor.u32 %v1479_v15, %v1356_v14  ;;  %314 = vmatpush.bf16.msra.mxu3 %v1369_v12  ;;  %v1297_v21 = vor.u32 %v1462_v18, %v1294_v19  ;;  %v1358_v22 = vld [vmem:[%s2308_s24 + $0xe8] sm:$0xf0]  ;;  %v1284_v23 = vld [vmem:[%s2308_s24 + $0x50] sm:$0xf]  ;;  %v1461_v24 = vld [vmem:[%s2308_s24 + $0x54] sm:$0xf0] }
  0x15   :  { %v1361_v25 = vor.u32 %v1478_v20, %v1358_v22  ;;  %v1348_v26 = vld [vmem:[%s2308_s24 + $0xd0] sm:$0xf]  ;;  %v1477_v27 = vld [vmem:[%s2308_s24 + $0xd4] sm:$0xf0]  ;;  %v1460_v28 = vld [vmem:[%s2308_s24 + $0x54] sm:$0xf]  ;;  %v1285_v29 = vor.u32 %v1461_v24, %v1284_v23 }
  0x16   :  { %276 = vmatpush.bf16.msra.mxu0 %v1293_v16  ;;  %v1286_v30 = vld [vmem:[%s2308_s24 + $0x58] sm:$0xf0]  ;;  %v1476_v31 = vld [vmem:[%s2308_s24 + $0xd4] sm:$0xf]  ;;  %v1349_v33 = vor.u32 %v1477_v27, %v1348_v26  ;;  %v1276_v35 = vld [vmem:[%s2308_s24 + $0x40] sm:$0xf] }
  0x17   :  { %v1350_v32 = vld [vmem:[%s2308_s24 + $0xd8] sm:$0xf0]  ;;  %289 = vmatpush.bf16.msra.mxu1 %v1357_v17  ;;  %302 = vmatpush.bf16.msra.mxu2 %v1297_v21  ;;  %v1289_v34 = vor.u32 %v1460_v28, %v1286_v30  ;;  %v1459_v36 = vld [vmem:[%s2308_s24 + $0x44] sm:$0xf0]  ;;  %v1340_v37 = vld [vmem:[%s2308_s24 + $0xc0] sm:$0xf] }
  0x18   :  { %315 = vmatpush.bf16.msra.mxu3 %v1361_v25  ;;  %v1353_v38 = vor.u32 %v1476_v31, %v1350_v32  ;;  %v1475_v39 = vld [vmem:[%s2308_s24 + $0xc4] sm:$0xf0]  ;;  %v1458_v40 = vld [vmem:[%s2308_s24 + $0x44] sm:$0xf]  ;;  %v1278_v41 = vld [vmem:[%s2308_s24 + $0x48] sm:$0xf0]  ;;  %v1277_v44 = vor.u32 %v1459_v36, %v1276_v35 }
  0x19   :  { %v1474_v42 = vld [vmem:[%s2308_s24 + $0xc4] sm:$0xf]  ;;  %v1342_v43 = vld [vmem:[%s2308_s24 + $0xc8] sm:$0xf0]  ;;  %v1341_v45 = vor.u32 %v1475_v39, %v1340_v37  ;;  %v1281_v46 = vor.u32 %v1458_v40, %v1278_v41  ;;  %v1268_v47 = vld [vmem:[%s2308_s24 + $0x30] sm:$0xf] }
  0x1a   :  { %277 = vmatpush.bf16.msra.mxu0 %v1285_v29  ;;  %v1457_v48 = vld [vmem:[%s2308_s24 + $0x34] sm:$0xf0]  ;;  %v1332_v49 = vld [vmem:[%s2308_s24 + $0xb0] sm:$0xf]  ;;  %v1345_v50 = vor.u32 %v1474_v42, %v1342_v43  ;;  %v1456_v52 = vld [vmem:[%s2308_s24 + $0x34] sm:$0xf] }
  0x1b   :  { %290 = vmatpush.bf16.msra.mxu1 %v1349_v33  ;;  %303 = vmatpush.bf16.msra.mxu2 %v1289_v34  ;;  %v1473_v51 = vld [vmem:[%s2308_s24 + $0xb4] sm:$0xf0]  ;;  %v1270_v53 = vld [vmem:[%s2308_s24 + $0x38] sm:$0xf0]  ;;  %v1472_v54 = vld [vmem:[%s2308_s24 + $0xb4] sm:$0xf]  ;;  %v1269_v56 = vor.u32 %v1457_v48, %v1268_v47 }
  0x1c   :  { %316 = vmatpush.bf16.msra.mxu3 %v1353_v38  ;;  %v1334_v55 = vld [vmem:[%s2308_s24 + $0xb8] sm:$0xf0]  ;;  %v1333_v57 = vor.u32 %v1473_v51, %v1332_v49  ;;  %v1273_v58 = vor.u32 %v1456_v52, %v1270_v53  ;;  %v1260_v59 = vld [vmem:[%s2308_s24 + $0x20] sm:$0xf]  ;;  %v1455_v60 = vld [vmem:[%s2308_s24 + $0x24] sm:$0xf0] }
  0x1d   :  { %v1324_v61 = vld [vmem:[%s2308_s24 + $0xa0] sm:$0xf]  ;;  %v1337_v62 = vor.u32 %v1472_v54, %v1334_v55  ;;  %v1471_v63 = vld [vmem:[%s2308_s24 + $0xa4] sm:$0xf0]  ;;  %v1454_v0 = vld [vmem:[%s2308_s24 + $0x24] sm:$0xf]  ;;  %v1261_v4 = vor.u32 %v1455_v60, %v1260_v59 }
  0x1e   :  { %278 = vmatpush.bf16.msra.mxu0 %v1277_v44  ;;  %v1262_v1 = vld [vmem:[%s2308_s24 + $0x28] sm:$0xf0]  ;;  %v1470_v2 = vld [vmem:[%s2308_s24 + $0xa4] sm:$0xf]  ;;  %v1252_v5 = vld [vmem:[%s2308_s24 + $0x10] sm:$0xf]  ;;  %v1325_v6 = vor.u32 %v1471_v63, %v1324_v61 }
  0x1f   :  { %291 = vmatpush.bf16.msra.mxu1 %v1341_v45  ;;  %304 = vmatpush.bf16.msra.mxu2 %v1281_v46  ;;  %v1326_v3 = vld [vmem:[%s2308_s24 + $0xa8] sm:$0xf0]  ;;  %v1265_v7 = vor.u32 %v1454_v0, %v1262_v1  ;;  %v1453_v8 = vld [vmem:[%s2308_s24 + $0x14] sm:$0xf0]  ;;  %v1316_v9 = vld [vmem:[%s2308_s24 + $0x90] sm:$0xf] }
  0x20   :  { %317 = vmatpush.bf16.msra.mxu3 %v1345_v50  ;;  %v1469_v10 = vld [vmem:[%s2308_s24 + $0x94] sm:$0xf0]  ;;  %v1329_v11 = vor.u32 %v1470_v2, %v1326_v3  ;;  %v1452_v12 = vld [vmem:[%s2308_s24 + $0x14] sm:$0xf]  ;;  %v1254_v13 = vld [vmem:[%s2308_s24 + $0x18] sm:$0xf0]  ;;  %v1253_v17 = vor.u32 %v1453_v8, %v1252_v5 }
  0x21   :  { %v74_v14 = vld [vmem:[%s2309_s3] sm:$0xf]  ;;  %v1468_v15 = vld [vmem:[%s2308_s24 + $0x94] sm:$0xf]  ;;  %v1318_v16 = vld [vmem:[%s2308_s24 + $0x98] sm:$0xf0]  ;;  %v1317_v18 = vor.u32 %v1469_v10, %v1316_v9  ;;  %v1257_v19 = vor.u32 %v1452_v12, %v1254_v13 }
  0x22   :  { %279 = vmatpush.bf16.msra.mxu0 %v1269_v56  ;;  %108 = vst [vmem:[#allocation1] ss:$4 sm:$0xff] %v74_v14  ;;  %v1244_v20 = vld [vmem:[%s2308_s24] sm:$0xf]  ;;  %v1451_v21 = vld [vmem:[%s2308_s24 + $0x4] sm:$0xf0]  ;;  %v1321_v23 = vor.u32 %v1468_v15, %v1318_v16 }
  0x23   :  { %292 = vmatpush.bf16.msra.mxu1 %v1333_v57  ;;  %305 = vmatpush.bf16.msra.mxu2 %v1273_v58  ;;  %v1308_v22 = vld [vmem:[%s2308_s24 + $0x80] sm:$0xf]  ;;  %v1467_v24 = vld [vmem:[%s2308_s24 + $0x84] sm:$0xf0]  ;;  %v1450_v25 = vld [vmem:[%s2308_s24 + $0x4] sm:$0xf]  ;;  %v1245_v29 = vor.u32 %v1451_v21, %v1244_v20 }
  0x24   :  { %318 = vmatpush.bf16.msra.mxu3 %v1337_v62  ;;  %v1246_v26 = vld [vmem:[%s2308_s24 + $0x8] sm:$0xf0]  ;;  %v1466_v27 = vld [vmem:[%s2308_s24 + $0x84] sm:$0xf]  ;;  %v1309_v31 = vor.u32 %v1467_v24, %v1308_v22  ;;  %v353_v37 = vld [vmem:[%s2311_s28 + $0x78] sm:$0xff]  ;;  %s2315_s30 = sld [smem:[#allocation9_spill]] }
  0x25   :  { %v1310_v28 = vld [vmem:[%s2308_s24 + $0x88] sm:$0xf0]  ;;  %v452_v30 = vld [vmem:[%s2310_s7] sm:$0xff]  ;;  %v1249_v32 = vor.u32 %v1450_v25, %v1246_v26  ;;  %v369_v39 = vld [vmem:[%s2311_s28 + $0xf8] sm:$0xff]  ;;  %s2313_s24 = sld [smem:[#allocation7_spill]]  ;;  %s1537_s3 = smov 16  }
  0x26   :  { %280 = vmatpush.bf16.msra.mxu0 %v1261_v4  ;;  %v1313_v33 = vor.u32 %v1466_v27, %v1310_v28  ;;  %v352_v40 = vld [vmem:[%s2311_s28 + $0x70] sm:$0xff]  ;;  %v351_v42 = vld [vmem:[%s2311_s28 + $0x68] sm:$0xff]  ;;  %v350_v44 = vld [vmem:[%s2311_s28 + $0x60] sm:$0xff] }
  0x27   :  { %293 = vmatpush.bf16.msra.mxu1 %v1325_v6  ;;  %306 = vmatpush.bf16.msra.mxu2 %v1265_v7  ;;  %v368_v41 = vld [vmem:[%s2311_s28 + $0xf0] sm:$0xff]  ;;  %v367_v43 = vld [vmem:[%s2311_s28 + $0xe8] sm:$0xff]  ;;  %v366_v45 = vld [vmem:[%s2311_s28 + $0xe0] sm:$0xff] }
  0x28   :  { %319 = vmatpush.bf16.msra.mxu3 %v1329_v11  ;;  %v349_v46 = vld [vmem:[%s2311_s28 + $0x58] sm:$0xff]  ;;  %v348_v48 = vld [vmem:[%s2311_s28 + $0x50] sm:$0xff]  ;;  %v347_v50 = vld [vmem:[%s2311_s28 + $0x48] sm:$0xff] }
  0x29   :  { %v109_v34 = vld.sshfl [vmem:[#allocation1] sm:$0xff pattern:$0x73625140]  ;;  %v110_v35 = vld.sshfl [vmem:[#allocation1 + $0x8] sm:$0xff pattern:$0x73625140] }
  0x2a   :  { %281 = vmatpush.bf16.msra.mxu0 %v1253_v17  ;;  %v113_v36 = vpack.c.bf16 %v109_v34, %v109_v34  ;;  %454 = vst [vmem:[#allocation1] ss:$2 sm:$0xff] %v452_v30  ;;  %v114_v38 = vpack.c.bf16 %v110_v35, %v110_v35  ;;  %v365_v47 = vld [vmem:[%s2311_s28 + $0xd8] sm:$0xff]  ;;  %v364_v49 = vld [vmem:[%s2311_s28 + $0xd0] sm:$0xff]  ;;  %v363_v51 = vld [vmem:[%s2311_s28 + $0xc8] sm:$0xff] }
  0x2b   :  { %294 = vmatpush.bf16.msra.mxu1 %v1317_v18  ;;  %307 = vmatpush.bf16.msra.mxu2 %v1257_v19  ;;  %v346_v52 = vld [vmem:[%s2311_s28 + $0x40] sm:$0xff]  ;;  %v345_v54 = vld [vmem:[%s2311_s28 + $0x38] sm:$0xff]  ;;  %v344_v56 = vld [vmem:[%s2311_s28 + $0x30] sm:$0xff] }
  0x2c   :  { %320 = vmatpush.bf16.msra.mxu3 %v1321_v23  ;;  %v362_v53 = vld [vmem:[%s2311_s28 + $0xc0] sm:$0xff]  ;;  %v361_v55 = vld [vmem:[%s2311_s28 + $0xb8] sm:$0xff]  ;;  %v343_v57 = vld [vmem:[%s2311_s28 + $0x28] sm:$0xff] }
  0x2d   :  { %v342_v58 = vld [vmem:[%s2311_s28 + $0x20] sm:$0xff]  ;;  %v360_v59 = vld [vmem:[%s2311_s28 + $0xb0] sm:$0xff]  ;;  %v341_v60 = vld [vmem:[%s2311_s28 + $0x18] sm:$0xff] }
  0x2e   :  { %282 = vmatpush.bf16.msra.mxu0 %v1245_v29  ;;  %v359_v61 = vld [vmem:[%s2311_s28 + $0xa8] sm:$0xff]  ;;  %v340_v62 = vld [vmem:[%s2311_s28 + $0x10] sm:$0xff]  ;;  %v358_v63 = vld [vmem:[%s2311_s28 + $0xa0] sm:$0xff] }
  0x2f   :  { %295 = vmatpush.bf16.msra.mxu1 %v1309_v31  ;;  %308 = vmatpush.bf16.msra.mxu2 %v1249_v32  ;;  %v339_v0 = vld [vmem:[%s2311_s28 + $0x8] sm:$0xff]  ;;  %v357_v1 = vld [vmem:[%s2311_s28 + $0x98] sm:$0xff]  ;;  %v338_v2 = vld [vmem:[%s2311_s28] sm:$0xff] }
  0x30   :  { %321 = vmatpush.bf16.msra.mxu3 %v1313_v33  ;;  %v356_v3 = vld [vmem:[%s2311_s28 + $0x90] sm:$0xff]  ;;  %v355_v4 = vld [vmem:[%s2311_s28 + $0x88] sm:$0xff]  ;;  %v354_v5 = vld [vmem:[%s2311_s28 + $0x80] sm:$0xff] }
  0x31   :  { %283 = vmatmul.bf16.vlgmr.msra.gmra.mxu0 %v113_v36  ;;  %v455_v22 = vld.sshfl [vmem:[#allocation1] sm:$0xff pattern:$0x75316420]  ;;  %v456_v25 = vld.sshfl [vmem:[#allocation1 + $0x8] sm:$0xff pattern:$0x75316420] }
  0x32   :  { %370 = vmatpush.msrb.mxu0 %v353_v37  ;;  %296 = vmatmul.bf16.vlgmr.msra.gmra.mxu1 %v114_v38 }
  0x33   :  { %390 = vmatpush.msrb.mxu1 %v369_v39  ;;  %309 = vmatmul.bf16.vlgmr.msra.gmra.mxu2 %v113_v36 }
  0x34   :  { %322 = vmatmul.bf16.vlgmr.msra.gmra.mxu3 %v114_v38  ;;  %371 = vmatpush.msrb.mxu0 %v352_v40 }
  0x35   :  { %391 = vmatpush.msrb.mxu1 %v368_v41  ;;  %1370 = vmatpush.msk.msrb.mxu2 %vm461_vm1, %v455_v22  ;;  %v684_v22 = vld [vmem:[%s2314_s29 + $0x38] sm:$0xff] }
  0x36   :  { %372 = vmatpush.msrb.mxu0 %v351_v42  ;;  %1372 = vmatpush.msk.msrb.mxu3 %vm461_vm1, %v456_v25  ;;  %v681_v25 = vld [vmem:[%s2314_s29 + $0x20] sm:$0xff] }
  0x37   :  { %392 = vmatpush.msrb.mxu1 %v367_v43 }
  0x38   :  { %373 = vmatpush.msrb.mxu0 %v350_v44 }
  0x39   :  { %393 = vmatpush.msrb.mxu1 %v366_v45  ;;  %v1489_v45 = vld [vmem:[%s2312_s2 + $0x38] sm:$0xff] }
  0x3a   :  { %374 = vmatpush.msrb.mxu0 %v349_v46  ;;  %v1497_v46 = vld [vmem:[%s2312_s2 + $0x78] sm:$0xff]  ;;  %646 = vmatpush.bf16.msra.mxu2 %v1489_v45 }
  0x3b   :  { %394 = vmatpush.msrb.mxu1 %v365_v47  ;;  %659 = vmatpush.bf16.msra.mxu3 %v1497_v46 }
  0x3c   :  { %375 = vmatpush.msrb.mxu0 %v348_v48  ;;  %v1488_v48 = vld [vmem:[%s2312_s2 + $0x30] sm:$0xff] }
  0x3d   :  { %395 = vmatpush.msrb.mxu1 %v364_v49  ;;  %v1496_v49 = vld [vmem:[%s2312_s2 + $0x70] sm:$0xff] }
  0x3e   :  { %376 = vmatpush.msrb.mxu0 %v347_v50  ;;  %647 = vmatpush.bf16.msra.mxu2 %v1488_v48 }
  0x3f   :  { %396 = vmatpush.msrb.mxu1 %v363_v51  ;;  %660 = vmatpush.bf16.msra.mxu3 %v1496_v49  ;;  %v1487_v51 = vld [vmem:[%s2312_s2 + $0x28] sm:$0xff] }
  0x40   :  { %377 = vmatpush.msrb.mxu0 %v346_v52  ;;  %v1495_v52 = vld [vmem:[%s2312_s2 + $0x68] sm:$0xff] }
  0x41   :  { %397 = vmatpush.msrb.mxu1 %v362_v53  ;;  %v1486_v53 = vld [vmem:[%s2312_s2 + $0x20] sm:$0xff] }
  0x42   :  { %378 = vmatpush.msrb.mxu0 %v345_v54  ;;  %648 = vmatpush.bf16.msra.mxu2 %v1487_v51  ;;  %v1494_v54 = vld [vmem:[%s2312_s2 + $0x60] sm:$0xff] }
  0x43   :  { %398 = vmatpush.msrb.mxu1 %v361_v55  ;;  %661 = vmatpush.bf16.msra.mxu3 %v1495_v52 }
  0x44   :  { %379 = vmatpush.msrb.mxu0 %v344_v56 }
  0x45   :  { %399 = vmatpush.msrb.mxu1 %v360_v59  ;;  %v1493_v59 = vld [vmem:[%s2312_s2 + $0x58] sm:$0xff] }
  0x46   :  { %380 = vmatpush.msrb.mxu0 %v343_v57  ;;  %649 = vmatpush.bf16.msra.mxu2 %v1486_v53 }
  0x47   :  { %400 = vmatpush.msrb.mxu1 %v359_v61  ;;  %662 = vmatpush.bf16.msra.mxu3 %v1494_v54 }
  0x48   :  { %381 = vmatpush.msrb.mxu0 %v342_v58  ;;  %v1485_v58 = vld [vmem:[%s2312_s2 + $0x18] sm:$0xff] }
  0x49   :  { %401 = vmatpush.msrb.mxu1 %v358_v63 }
  0x4a   :  { %382 = vmatpush.msrb.mxu0 %v341_v60  ;;  %650 = vmatpush.bf16.msra.mxu2 %v1485_v58 }
  0x4b   :  { %402 = vmatpush.msrb.mxu1 %v357_v1  ;;  %663 = vmatpush.bf16.msra.mxu3 %v1493_v59 }
  0x4c   :  { %383 = vmatpush.msrb.mxu0 %v340_v62  ;;  %v432_v62 = vld [vmem:[%s2313_s24] sm:$0x3] }
  0x4d   :  { %403 = vmatpush.msrb.mxu1 %v356_v3 }
  0x4e   :  { %384 = vmatpush.msrb.mxu0 %v339_v0 }
  0x4f   :  { %404 = vmatpush.msrb.mxu1 %v355_v4 }
  0x50   :  { %385 = vmatpush.msrb.mxu0 %v338_v2 }
  0x51   :  { %405 = vmatpush.msrb.mxu1 %v354_v5 }
  0xae   :  { %v284_v6 = vpop.f32.mrf.mxu0 }
  0xaf   :  { %v297_v7 = vpop.f32.mrf.mxu1 }
  0xb0   :  { %v1953_v8 = vadd.f32 %v297_v7, %v284_v6  ;;  %v1484_v6 = vld [vmem:[%s2312_s2 + $0x10] sm:$0xff] }
  0xb1   :  { %v1492_v7 = vld [vmem:[%s2312_s2 + $0x50] sm:$0xff]  ;;  %651 = vmatpush.bf16.msra.mxu2 %v1484_v6  ;;  %v799_v6 = vld [vmem:[%s2280_s9 + $0x78] sm:$0xff] }
  0xb2   :  { %v327_v9 = vmul.f32 %v1953_v8, %v1953_v8  ;;  %664 = vmatpush.bf16.msra.mxu3 %v1492_v7  ;;  %v798_v7 = vld [vmem:[%s2280_s9 + $0x70] sm:$0xff] }
  0xb4   :  { %v331_v10 = vrot.slane %v327_v9, 6  ;;  %v1483_v9 = vld [vmem:[%s2312_s2 + $0x8] sm:$0xff] }
  0xb5   :  { %652 = vmatpush.bf16.msra.mxu2 %v1483_v9 }
  0xb6   :  { %v310_v11 = vpop.f32.mrf.mxu2  ;;  %v286_v13 = vpop.f32.mrf.mxu0  ;;  %v336_v14 = vsel %vm335_vm0, %v1953_v8, %v331_v10  ;;  %v1491_v10 = vld [vmem:[%s2312_s2 + $0x48] sm:$0xff] }
  0xb7   :  { %v323_v12 = vpop.f32.mrf.mxu3  ;;  %v299_v16 = vpop.f32.mrf.mxu1  ;;  %386 = vmatmul.f32.vlgmr.msrb.gmra.mxu0 %v336_v14  ;;  %665 = vmatpush.bf16.msra.mxu3 %v1491_v10  ;;  %v692_v13 = vld [vmem:[%s2314_s29 + $0x78] sm:$0xff]  ;;  %v691_v14 = vld [vmem:[%s2314_s29 + $0x70] sm:$0xff]  ;;  %v797_v10 = vld [vmem:[%s2280_s9 + $0x68] sm:$0xff] }
  0xb8   :  { %v1959_v15 = vadd.f32 %v323_v12, %v310_v11  ;;  %v1482_v11 = vld [vmem:[%s2312_s2] sm:$0xff]  ;;  %693 = vmatpush.msra.mxu0 %v692_v13  ;;  %v690_v16 = vld [vmem:[%s2314_s29 + $0x68] sm:$0xff]  ;;  %v795_v13 = vld [vmem:[%s2280_s9 + $0x58] sm:$0xff] }
  0xb9   :  { %v1490_v12 = vld [vmem:[%s2312_s2 + $0x40] sm:$0xff]  ;;  %653 = vmatpush.bf16.msra.mxu2 %v1482_v11 }
  0xba   :  { %v328_v17 = vmul.f32 %v1959_v15, %v1959_v15  ;;  %694 = vmatpush.msra.mxu0 %v691_v14  ;;  %v794_v14 = vld [vmem:[%s2280_s9 + $0x50] sm:$0xff] }
  0xbb   :  { %666 = vmatpush.bf16.msra.mxu3 %v1490_v12  ;;  %v796_v12 = vld [vmem:[%s2280_s9 + $0x60] sm:$0xff] }
  0xbc   :  { %v332_v18 = vrot.slane %v328_v17, 6  ;;  %v689_v17 = vld [vmem:[%s2314_s29 + $0x60] sm:$0xff]  ;;  %695 = vmatpush.msra.mxu0 %v690_v16  ;;  %v793_v16 = vld [vmem:[%s2280_s9 + $0x48] sm:$0xff] }
  0xbe   :  { %v312_v19 = vpop.f32.mrf.mxu2  ;;  %v337_v20 = vsel %vm335_vm0, %v1959_v15, %v332_v18  ;;  %v688_v18 = vld [vmem:[%s2314_s29 + $0x58] sm:$0xff]  ;;  %696 = vmatpush.msra.mxu0 %v689_v17 }
  0xbf   :  { %v325_v21 = vpop.f32.mrf.mxu3  ;;  %406 = vmatmul.f32.vlgmr.msrb.gmra.mxu1 %v337_v20  ;;  %v687_v19 = vld [vmem:[%s2314_s29 + $0x50] sm:$0xff]  ;;  %v686_v20 = vld [vmem:[%s2314_s29 + $0x48] sm:$0xff] }
  0xc0   :  { %697 = vmatpush.msra.mxu0 %v688_v18  ;;  %v685_v21 = vld [vmem:[%s2314_s29 + $0x40] sm:$0xff] }
  0xc2   :  { %698 = vmatpush.msra.mxu0 %v687_v19  ;;  %v792_v19 = vld [vmem:[%s2280_s9 + $0x40] sm:$0xff] }
  0xc4   :  { %699 = vmatpush.msra.mxu0 %v686_v20 }
  0xc6   :  { %700 = vmatpush.msra.mxu0 %v685_v21  ;;  %v791_v21 = vld [vmem:[%s2280_s9 + $0x38] sm:$0xff] }
  0xc8   :  { %701 = vmatpush.msra.mxu0 %v684_v22 }
 0x134   :  { %v387_v23 = vpop.f32.mrf.mxu0 }
 0x13c   :  { %v407_v24 = vpop.f32.mrf.mxu1 }
 0x13d   :  { %v408_v26 = vadd.f32 %v407_v24, %v387_v23  ;;  %v683_v23 = vld [vmem:[%s2314_s29 + $0x30] sm:$0xff]  ;;  %v682_v24 = vld [vmem:[%s2314_s29 + $0x28] sm:$0xff] }
 0x13e   :  { %702 = vmatpush.msra.mxu0 %v683_v23  ;;  %v790_v23 = vld [vmem:[%s2280_s9 + $0x30] sm:$0xff] }
 0x13f   :  { %v411_v27 = vsel %vm410_vm2, %v408_v26, 0.0  ;;  %v420_v28 = vrot.slane %v408_v26, 2 }
 0x140   :  { %v412_v29 = vrot.slane %v411_v27, 4  ;;  %703 = vmatpush.msra.mxu0 %v682_v24 }
 0x141   :  { %v422_v30 = vsel %vm410_vm2, %v420_v28, 0.0 }
 0x142   :  { %v413_v31 = vadd.f32 %v412_v29, %v411_v27  ;;  %v423_v32 = vrot.slane %v422_v30, 4  ;;  %704 = vmatpush.msra.mxu0 %v681_v25  ;;  %v789_v25 = vld [vmem:[%s2280_s9 + $0x28] sm:$0xff] }
 0x144   :  { %v414_v33 = vrot.slane %v413_v31, 2  ;;  %v424_v34 = vadd.f32 %v423_v32, %v422_v30 }
 0x146   :  { %v415_v35 = vadd.f32 %v414_v33, %v413_v31  ;;  %v425_v36 = vrot.slane %v424_v34, 2 }
 0x148   :  { %v416_v37 = vrot.slane %v415_v35, 1  ;;  %v426_v38 = vadd.f32 %v425_v36, %v424_v34 }
 0x14a   :  { %v417_v39 = vadd.f32 %v416_v37, %v415_v35  ;;  %v427_v40 = vrot.slane %v426_v38, 1 }
 0x14c   :  { %v418_v41 = vmul.f32 0.0078125, %v417_v39  ;;  %v428_v42 = vadd.f32 %v427_v40, %v426_v38  ;;  %v680_v40 = vld [vmem:[%s2314_s29 + $0x18] sm:$0xff] }
 0x14d   :  { %705 = vmatpush.msra.mxu0 %v680_v40  ;;  %v827_v40 = vld [vmem:[%s2282_s11 + $0x10] sm:$0xff] }
 0x14e   :  { %v429_v43 = vmul.f32 0.0078125, %v428_v42  ;;  %v430_v44 = vmul.f32 %v418_v41, %v418_v41 }
 0x150   :  { %v431_v47 = vsub.f32 %v429_v43, %v430_v44 }
 0x152   :  { %v433_v50 = vadd.f32 1e-05, %v431_v47 }
 0x154   :  { %1507 = vrsqrt.f32 %v433_v50  ;;  %vm440_vm4 = vweird.f32 %v433_v50 }
 0x15a   :  { %v1508_v55 = vpop.eup %1507 }
 0x15b   :  { %v435_v56 = vmul.f32 %v1508_v55, %v433_v50  ;;  %vm441_vm3 = vweird.f32 %v1508_v55 }
 0x15c   :  { %vm442_vm5 = vmor %vm440_vm4, %vm441_vm3 }
 0x15d   :  { %v436_v57 = vmul.f32 %v1508_v55, %v435_v56 }
 0x15f   :  { %v437_v60 = vmul.f32 0.5, %v436_v57 }
 0x161   :  { %v438_v61 = vsub.f32 1.5, %v437_v60 }
 0x163   :  { %v439_v63 = vmul.f32 %v1508_v55, %v438_v61 }
 0x165   :  { %v443_v0 = vsel %vm442_vm5, %v1508_v55, %v439_v63  ;;  %vm998_vm5 = vcmask 130048  }
 0x166   :  { %v444_v1 = vmul.f32 %v443_v0, %v432_v62 }
 0x168   :  { %v445_v2 = vmul.f32 %v444_v1, %v418_v41  ;;  %v677_v41 = vld [vmem:[%s2314_s29] sm:$0xff] }
 0x16a   :  { %v447_v3 = vrot.slane %v445_v2, 7 }
 0x16c   :  { %v449_v4 = vsub.f32 %v432_v62, %v447_v3 }
 0x16e   :  { %v451_v5 = vsel %vm450_vm6, %v444_v1, %v449_v4  ;;  %v754_v1 = vld [vmem:[%s2315_s30] sm:$0xff] }
 0x16f   :  { %1371 = vmatmul.msk.f32.vlgmr.msrb.gmra.mxu2 %vm457_vm7, %v451_v5  ;;  %1373 = vmatmul.msk.f32.vlgmr.msrb.gmra.mxu3 %vm457_vm7, %v451_v5 }
 0x170   :  { %774 = vmatpush.msra.mxu1 %v754_v1 }
 0x172   :  { %800 = vmatpush.msrb.mxu1 %v799_v6 }
 0x174   :  { %801 = vmatpush.msrb.mxu1 %v798_v7 }
 0x176   :  { %802 = vmatpush.msrb.mxu1 %v797_v10 }
 0x178   :  { %803 = vmatpush.msrb.mxu1 %v796_v12 }
 0x17a   :  { %804 = vmatpush.msrb.mxu1 %v795_v13 }
 0x17c   :  { %805 = vmatpush.msrb.mxu1 %v794_v14 }
 0x17e   :  { %806 = vmatpush.msrb.mxu1 %v793_v16  ;;  %v874_v16 = vld [vmem:[%s2284_s10] sm:$0x3] }
 0x180   :  { %807 = vmatpush.msrb.mxu1 %v792_v19 }
 0x182   :  { %808 = vmatpush.msrb.mxu1 %v791_v21 }
 0x184   :  { %809 = vmatpush.msrb.mxu1 %v790_v23 }
 0x186   :  { %810 = vmatpush.msrb.mxu1 %v789_v25  ;;  %v924_v25 = vld [vmem:[%s2287_s13 + $0x10] sm:$0xff] }
 0x1f2   :  { %v483_v26 = vpop.f32.mrf.mxu2  ;;  %v503_v27 = vpop.f32.mrf.mxu3 }
 0x1f3   :  { %v506_v28 = vperm.slane %v483_v26, 0  ;;  %v507_v29 = vperm.slane %v503_v27, 0  ;;  %v510_v31 = vperm.slane %v483_v26, 1  ;;  %v511_v33 = vperm.slane %v503_v27, 1  ;;  %v735_v26 = vld [vmem:[%s2281_s6] sm:$0x3] }
 0x1f5   :  { %v508_v30 = vmul.f32 %v506_v28, %v1953_v8  ;;  %v509_v32 = vmul.f32 %v507_v29, %v1959_v15  ;;  %v679_v8 = vld [vmem:[%s2314_s29 + $0x10] sm:$0xff]  ;;  %v678_v15 = vld [vmem:[%s2314_s29 + $0x8] sm:$0xff]  ;;  %s1538_s29 = smov 64  }
 0x1f6   :  { %706 = vmatpush.msra.mxu0 %v679_v8  ;;  %v826_v8 = vld [vmem:[%s2282_s11 + $0x8] sm:$0xff] }
 0x1f7   :  { %v512_v34 = vadd.f32 %v510_v31, %v508_v30  ;;  %v513_v35 = vadd.f32 %v511_v33, %v509_v32 }
 0x1f8   :  { %707 = vmatpush.msra.mxu0 %v678_v15 }
 0x1f9   :  { %v514_v36 = vmax.f32 %v512_v34, 0.0  ;;  %v515_v37 = vmax.f32 %v513_v35, 0.0  ;;  %v788_v34 = vld [vmem:[%s2280_s9 + $0x20] sm:$0xff]  ;;  %v787_v35 = vld [vmem:[%s2280_s9 + $0x18] sm:$0xff] }
 0x1fa   :  { %708 = vmatpush.msra.mxu0 %v677_v41  ;;  %811 = vmatpush.msrb.mxu1 %v788_v34 }
 0x1fb   :  { %v548_v38 = vpack.c.bf16 %v514_v36, %v514_v36  ;;  %v549_v39 = vpack.c.bf16 %v515_v37, %v515_v37  ;;  %v786_v36 = vld [vmem:[%s2280_s9 + $0x10] sm:$0xff]  ;;  %v785_v37 = vld [vmem:[%s2280_s9 + $0x8] sm:$0xff] }
 0x1fc   :  { %812 = vmatpush.msrb.mxu1 %v787_v35  ;;  %v1505_v35 = vld [vmem:[%s2286_s15] ss:$0 sm:$0xff]  ;;  %s1535_s15 = smov 112  }
 0x1fd   :  { %654 = vmatmul.bf16.vlgmr.msra.gmra.mxu2 %v548_v38  ;;  %667 = vmatmul.bf16.vlgmr.msra.gmra.mxu3 %v549_v39  ;;  %v784_v38 = vld [vmem:[%s2280_s9] sm:$0xff]  ;;  %v828_v39 = vld [vmem:[%s2282_s11 + $0x18] sm:$0xff] }
 0x1fe   :  { %813 = vmatpush.msrb.mxu1 %v786_v36  ;;  %845 = vmatpush.msrb.mxu2 %v828_v39 }
 0x200   :  { %814 = vmatpush.msrb.mxu1 %v785_v37  ;;  %846 = vmatpush.msrb.mxu2 %v827_v40 }
 0x202   :  { %815 = vmatpush.msrb.mxu1 %v784_v38  ;;  %847 = vmatpush.msrb.mxu2 %v826_v8 }
 0x280   :  { %v655_v42 = vpop.f32.mrf.mxu2  ;;  %v668_v43 = vpop.f32.mrf.mxu3 }
 0x281   :  { %v2067_v44 = vadd.f32 %v668_v43, %v655_v42 }
 0x283   :  { %v672_v45 = vmul.f32 %v2067_v44, %v2067_v44 }
 0x285   :  { %v674_v46 = vrot.slane %v672_v45, 6 }
 0x287   :  { %v676_v47 = vsel %vm335_vm0, %v2067_v44, %v674_v46 }
 0x288   :  { %v657_v48 = vpop.f32.mrf.mxu2  ;;  %v670_v49 = vpop.f32.mrf.mxu3  ;;  %709 = vmatmul.f32.vlgmr.msra.gmra.mxu0 %v676_v47  ;;  %v825_v47 = vld [vmem:[%s2282_s11] sm:$0xff]  ;;  %s1536_s11 = smov 48  }
 0x289   :  { %848 = vmatpush.msrb.mxu2 %v825_v47 }
 0x305   :  { %v710_v50 = vpop.f32.mrf.mxu0 }
 0x306   :  { %v714_v51 = vsel %vm713_vm8, %v710_v50, 0.0  ;;  %v723_v52 = vrot.slane %v710_v50, 2 }
 0x307   :  { %v715_v53 = vrot.slane %v714_v51, 4 }
 0x308   :  { %v725_v54 = vsel %vm713_vm8, %v723_v52, 0.0 }
 0x309   :  { %v716_v55 = vadd.f32 %v715_v53, %v714_v51  ;;  %v726_v56 = vrot.slane %v725_v54, 4 }
 0x30b   :  { %v717_v57 = vrot.slane %v716_v55, 2  ;;  %v727_v58 = vadd.f32 %v726_v56, %v725_v54 }
 0x30d   :  { %v718_v59 = vadd.f32 %v717_v57, %v716_v55  ;;  %v728_v60 = vrot.slane %v727_v58, 2 }
 0x30f   :  { %v719_v61 = vrot.slane %v718_v59, 1  ;;  %v729_v62 = vadd.f32 %v728_v60, %v727_v58 }
 0x311   :  { %v720_v63 = vadd.f32 %v719_v61, %v718_v59  ;;  %v730_v0 = vrot.slane %v729_v62, 1 }
 0x313   :  { %v721_v2 = vmul.f32 0.03125, %v720_v63  ;;  %v731_v3 = vadd.f32 %v730_v0, %v729_v62 }
 0x315   :  { %v732_v4 = vmul.f32 0.03125, %v731_v3  ;;  %v733_v5 = vmul.f32 %v721_v2, %v721_v2 }
 0x317   :  { %v734_v9 = vsub.f32 %v732_v4, %v733_v5 }
 0x319   :  { %v736_v11 = vadd.f32 1e-05, %v734_v9 }
 0x31b   :  { %1509 = vrsqrt.f32 %v736_v11  ;;  %vm743_vm10 = vweird.f32 %v736_v11 }
 0x321   :  { %v1510_v17 = vpop.eup %1509 }
 0x322   :  { %v738_v18 = vmul.f32 %v1510_v17, %v736_v11  ;;  %vm744_vm9 = vweird.f32 %v1510_v17 }
 0x323   :  { %vm745_vm11 = vmor %vm743_vm10, %vm744_vm9  ;;  %vm1121_vm10 = vcmask 320512  }
 0x324   :  { %v739_v20 = vmul.f32 %v1510_v17, %v738_v18 }
 0x326   :  { %v740_v22 = vmul.f32 0.5, %v739_v20 }
 0x328   :  { %v741_v24 = vsub.f32 1.5, %v740_v22 }
 0x32a   :  { %v742_v27 = vmul.f32 %v1510_v17, %v741_v24  ;;  %v925_v24 = vld [vmem:[%s2287_s13 + $0x18] sm:$0xff] }
 0x32b   :  { %945 = vmatpush.msrb.mxu0 %v925_v24 }
 0x32c   :  { %v746_v28 = vsel %vm745_vm11, %v1510_v17, %v742_v27  ;;  %v922_v27 = vld [vmem:[%s2287_s13] sm:$0xff]  ;;  %vm1133_vm11 = vcmask 326656  }
 0x32d   :  { %v747_v29 = vmul.f32 %v746_v28, %v735_v26  ;;  %946 = vmatpush.msrb.mxu0 %v924_v25  ;;  %v1504_v28 = vld [vmem:[%s2285_s16] ss:$0 sm:$0xff] }
 0x32e   :  { %979 = vrot.lane.b32.xlu0 %v1504_v28, %s1533_s4 }
 0x32f   :  { %v748_v30 = vmul.f32 %v747_v29, %v721_v2  ;;  %v893_v2 = vld [vmem:[%s2283_s12] sm:$0xff] }
 0x330   :  { %912 = vmatpush.msrb.mxu3 %v893_v2 }
 0x331   :  { %v750_v31 = vrot.slane %v748_v30, 7 }
 0x333   :  { %v752_v32 = vsub.f32 %v735_v26, %v750_v31  ;;  %v923_v26 = vld [vmem:[%s2287_s13 + $0x8] sm:$0xff]  ;;  %s1534_s13 = smov 32  }
 0x334   :  { %947 = vmatpush.msrb.mxu0 %v923_v26 }
 0x335   :  { %v753_v33 = vsel %vm450_vm6, %v747_v29, %v752_v32 }
 0x336   :  { %1438 = vmatmul.msk.f32.vlgmr.msra.gmra.mxu1 %vm755_vm12, %v753_v33  ;;  %948 = vmatpush.msrb.mxu0 %v922_v27 }
 0x3b3   :  { %v776_v15 = vpop.f32.mrf.mxu1 }
 0x3b4   :  { %v779_v41 = vperm.slane %v776_v15, 0  ;;  %v781_v43 = vperm.slane %v776_v15, 1 }
 0x3b6   :  { %v780_v42 = vmul.f32 %v779_v41, %v2067_v44 }
 0x3b8   :  { %v782_v45 = vadd.f32 %v781_v43, %v780_v42 }
 0x3ba   :  { %v783_v46 = vmax.f32 %v782_v45, 0.0 }
 0x3bc   :  { %816 = vmatmul.f32.vlgmr.msrb.gmra.mxu1 %v783_v46 }
 0x439   :  { %v2144_v48 = vpop.f32.mrf.mxu1 }
 0x43a   :  { %v820_v49 = vmul.f32 %v2144_v48, %v2144_v48 }
 0x43c   :  { %v822_v50 = vrot.slane %v820_v49, 6 }
 0x43e   :  { %v824_v51 = vsel %vm335_vm0, %v2144_v48, %v822_v50 }
 0x43f   :  { %1439 = vmatmul.msk.f32.vlgmr.msrb.gmra.mxu2 %vm829_vm13, %v824_v51 }
 0x4c2   :  { %v850_v44 = vpop.f32.mrf.mxu2 }
 0x4c3   :  { %v853_v52 = vsel %vm713_vm8, %v850_v44, 0.0  ;;  %v862_v53 = vrot.slane %v850_v44, 2 }
 0x4c4   :  { %v854_v54 = vrot.slane %v853_v52, 4 }
 0x4c5   :  { %v864_v55 = vsel %vm713_vm8, %v862_v53, 0.0 }
 0x4c6   :  { %v855_v56 = vadd.f32 %v854_v54, %v853_v52  ;;  %v865_v57 = vrot.slane %v864_v55, 4 }
 0x4c8   :  { %v856_v58 = vrot.slane %v855_v56, 2  ;;  %v866_v59 = vadd.f32 %v865_v57, %v864_v55  ;;  %v954_v55 = vld [vmem:[%s2288_s14 + $0x8] sm:$0xff] }
 0x4c9   :  { %1015 = vmatpush.msra.mxu2 %v954_v55 }
 0x4ca   :  { %v857_v60 = vadd.f32 %v856_v58, %v855_v56  ;;  %v867_v61 = vrot.slane %v866_v59, 2  ;;  %v953_v56 = vld [vmem:[%s2288_s14] sm:$0xff] }
 0x4cb   :  { %1016 = vmatpush.msra.mxu2 %v953_v56 }
 0x4cc   :  { %v858_v62 = vrot.slane %v857_v60, 1  ;;  %v868_v63 = vadd.f32 %v867_v61, %v866_v59 }
 0x4ce   :  { %v859_v0 = vadd.f32 %v858_v62, %v857_v60  ;;  %v869_v1 = vrot.slane %v868_v63, 1 }
 0x4d0   :  { %v860_v3 = vmul.f32 0.125, %v859_v0  ;;  %v870_v4 = vadd.f32 %v869_v1, %v868_v63 }
 0x4d2   :  { %v871_v5 = vmul.f32 0.125, %v870_v4  ;;  %v872_v6 = vmul.f32 %v860_v3, %v860_v3 }
 0x4d4   :  { %v873_v7 = vsub.f32 %v871_v5, %v872_v6 }
 0x4d6   :  { %v875_v9 = vadd.f32 1e-05, %v873_v7 }
 0x4d8   :  { %1511 = vrsqrt.f32 %v875_v9  ;;  %vm882_vm15 = vweird.f32 %v875_v9 }
 0x4de   :  { %v1512_v10 = vpop.eup %1511 }
 0x4df   :  { %v877_v11 = vmul.f32 %v1512_v10, %v875_v9  ;;  %vm883_vm14 = vweird.f32 %v1512_v10 }
 0x4e0   :  { %vm884_vm0 = vmor %vm882_vm15, %vm883_vm14  ;;  %vm1235_vm14 = vcmask 302080  }
 0x4e1   :  { %v878_v12 = vmul.f32 %v1512_v10, %v877_v11 }
 0x4e3   :  { %v879_v13 = vmul.f32 0.5, %v878_v12 }
 0x4e5   :  { %v880_v14 = vsub.f32 1.5, %v879_v13 }
 0x4e7   :  { %v881_v17 = vmul.f32 %v1512_v10, %v880_v14 }
 0x4e9   :  { %v885_v18 = vsel %vm884_vm0, %v1512_v10, %v881_v17 }
 0x4ea   :  { %v886_v19 = vmul.f32 %v885_v18, %v874_v16 }
 0x4ec   :  { %v887_v20 = vmul.f32 %v886_v19, %v860_v3 }
 0x4ee   :  { %v889_v21 = vrot.slane %v887_v20, 7 }
 0x4f0   :  { %v891_v22 = vsub.f32 %v874_v16, %v889_v21  ;;  %v1067_v21 = vld [vmem:[%s2289_s17 + $0x8] sm:$0xff] }
 0x4f1   :  { %1087 = vmatpush.msra.mxu3 %v1067_v21 }
 0x4f2   :  { %v892_v23 = vsel %vm450_vm6, %v886_v19, %v891_v22  ;;  %v1066_v22 = vld [vmem:[%s2289_s17] sm:$0xff] }
 0x4f3   :  { %1440 = vmatmul.msk.f32.vlgmr.msrb.gmra.mxu3 %vm755_vm12, %v892_v23  ;;  %vm1218_vm12 = vcmask 33792  }
 0x4f4   :  { %1088 = vmatpush.msra.mxu3 %v1066_v22 }
 0x576   :  { %v914_v29 = vpop.f32.mrf.mxu3 }
 0x577   :  { %v917_v30 = vperm.slane %v914_v29, 0  ;;  %v919_v32 = vperm.slane %v914_v29, 1  ;;  %v1096_v29 = vld [vmem:[%s2290_s18 + $0x18] sm:$0xff] }
 0x578   :  { %1112 = vmatpush.msra.mxu0 %v1096_v29 }
 0x579   :  { %v918_v31 = vmul.f32 %v917_v30, %v2144_v48  ;;  %v980_v48 = vpop.permute.xlu0 %979  ;;  %v1095_v30 = vld [vmem:[%s2290_s18 + $0x10] sm:$0xff] }
 0x57a   :  { %1113 = vmatpush.msra.mxu0 %v1095_v30 }
 0x57b   :  { %v920_v33 = vadd.f32 %v919_v32, %v918_v31  ;;  %v1094_v31 = vld [vmem:[%s2290_s18 + $0x8] sm:$0xff]  ;;  %v1093_v32 = vld [vmem:[%s2290_s18] sm:$0xff] }
 0x57c   :  { %1114 = vmatpush.msra.mxu0 %v1094_v31 }
 0x57d   :  { %v921_v34 = vmax.f32 %v920_v33, 0.0 }
 0x57e   :  { %1115 = vmatpush.msra.mxu0 %v1093_v32 }
 0x57f   :  { %1441 = vmatmul.msk.f32.vlgmr.msrb.gmra.mxu0 %vm829_vm13, %v921_v34 }
 0x5fc   :  { %v950_v36 = vpop.f32.mrf.mxu0 }
 0x5fd   :  { %v2181_v37 = vadd.f32 %v1505_v35, %v950_v36 }
 0x5ff   :  { %v959_v38 = vadd.f32 %v1504_v28, %v2181_v37 }
 0x601   :  { %v1442_v39 = vmul.f32 -1.442695, %v959_v38  ;;  %v1132_v38 = vld [vmem:[%s2291_s20 + $0x20] sm:$0xff] }
 0x602   :  { %1148 = vmatpush.msra.mxu1 %v1132_v38 }
 0x603   :  { %1513 = vpow2.f32 %v1442_v39  ;;  %v1131_v39 = vld [vmem:[%s2291_s20 + $0x18] sm:$0xff] }
 0x604   :  { %1149 = vmatpush.msra.mxu1 %v1131_v39 }
 0x609   :  { %v1514_v40 = vpop.eup %1513 }
 0x60a   :  { %v963_v8 = vadd.f32 1.0, %v1514_v40  ;;  %v1130_v40 = vld [vmem:[%s2291_s20 + $0x10] sm:$0xff] }
 0x60b   :  { %1150 = vmatpush.msra.mxu1 %v1130_v40 }
 0x60c   :  { %1515 = vrcp.f32 %v963_v8  ;;  %v975_v43 = vand.u32 2147483648, %v963_v8  ;;  %v973_v46 = vand.u32 2147483647, %v963_v8  ;;  %vm969_vm2 = vweird.f32 %v963_v8 }
 0x60e   :  { %v976_v49 = vor.u32 1.1754944e-38, %v975_v43  ;;  %vm974_vm4 = vcmp.eq.f32.partialorder %v973_v46, 8.507059e+37  ;;  %v1163_v46 = vld [vmem:[%s2292_s19 + $0x20] sm:$0xff] }
 0x60f   :  { %1178 = vmatpush.msrb.mxu2 %v1163_v46 }
 0x612   :  { %v1516_v15 = vpop.eup %1515 }
 0x613   :  { %v965_v41 = vmul.f32 %v1516_v15, %v963_v8  ;;  %vm970_vm1 = vweird.f32 %v1516_v15  ;;  %v1129_v8 = vld [vmem:[%s2291_s20 + $0x8] sm:$0xff] }
 0x614   :  { %vm971_vm3 = vmor %vm969_vm2, %vm970_vm1  ;;  %1151 = vmatpush.msra.mxu1 %v1129_v8 }
 0x615   :  { %v966_v42 = vsub.f32 1.0, %v965_v41 }
 0x617   :  { %v967_v45 = vmul.f32 %v1516_v15, %v966_v42 }
 0x619   :  { %v968_v47 = vadd.f32 %v1516_v15, %v967_v45 }
 0x61b   :  { %v972_v50 = vsel %vm971_vm3, %v1516_v15, %v968_v47  ;;  %v1128_v15 = vld [vmem:[%s2291_s20] sm:$0xff]  ;;  %v1162_v47 = vld [vmem:[%s2292_s19 + $0x18] sm:$0xff] }
 0x61c   :  { %v977_v51 = vsel %vm974_vm4, %v976_v49, %v972_v50  ;;  %1152 = vmatpush.msra.mxu1 %v1128_v15  ;;  %1179 = vmatpush.msrb.mxu2 %v1162_v47  ;;  %v1160_v49 = vld [vmem:[%s2292_s19 + $0x8] sm:$0xff]  ;;  %v1159_v50 = vld [vmem:[%s2292_s19] sm:$0xff] }
 0x61d   :  { %v982_v44 = vmul.f32 %v980_v48, %v977_v51  ;;  %v989_v57 = vsub.f32 1.0, %v977_v51  ;;  %v1161_v48 = vld [vmem:[%s2292_s19 + $0x10] sm:$0xff]  ;;  %v1190_v51 = vld [vmem:[%s2293_s21 + $0x18] sm:$0xff] }
 0x61e   :  { %1180 = vmatpush.msrb.mxu2 %v1161_v48  ;;  %1210 = vmatpush.msrb.mxu3 %v1190_v51 }
 0x61f   :  { %984 = vrot.lane.b32.xlu0 %v982_v44, %s1534_s13  ;;  %v1189_v44 = vld [vmem:[%s2293_s21 + $0x10] sm:$0xff] }
 0x620   :  { %1181 = vmatpush.msrb.mxu2 %v1160_v49  ;;  %1211 = vmatpush.msrb.mxu3 %v1189_v44 }
 0x622   :  { %1182 = vmatpush.msrb.mxu2 %v1159_v50 }
 0x691   :  { %v985_v52 = vpop.permute.xlu0 %984 }
 0x692   :  { %v987_v53 = vadd.f32 %v985_v52, %v2181_v37  ;;  %v1188_v52 = vld [vmem:[%s2293_s21 + $0x8] sm:$0xff] }
 0x693   :  { %1212 = vmatpush.msrb.mxu3 %v1188_v52 }
 0x694   :  { %1517 = vtanh.f32 %v987_v53  ;;  %v1187_v53 = vld [vmem:[%s2293_s21] sm:$0xff] }
 0x695   :  { %1213 = vmatpush.msrb.mxu3 %v1187_v53 }
 0x69a   :  { %v1518_v54 = vpop.eup %1517 }
 0x69b   :  { %991 = vrot.lane.b32.xlu1 %v1518_v54, %s1535_s15 }
 0x70d   :  { %v992_v58 = vpop.permute.xlu1 %991 }
 0x70e   :  { %v994_v59 = vmul.f32 %v992_v58, %v989_v57  ;;  %v1506_v58 = vld [vmem:[%s2294_s22] ss:$0 sm:$0xff] }
 0x710   :  { %996 = vrot.lane.b32.xlu1 %v994_v59, %s1535_s15 }
 0x782   :  { %v997_v60 = vpop.permute.xlu1 %996 }
 0x783   :  { %1443 = vmatmul.msk.f32.vlgmr.msra.gmra.mxu2 %vm998_vm5, %v997_v60 }
 0x806   :  { %v1018_v61 = vpop.f32.mrf.mxu2 }
 0x807   :  { %v1019_v62 = vadd.f32 %v1504_v28, %v1018_v61 }
 0x809   :  { %1022 = vrot.lane.b32.xlu2 %v1019_v62, %s1536_s11 }
 0x811   :  { %1045 = vrot.lane.b32.xlu2 %v1019_v62, %s1537_s3 }
 0x819   :  { %1061 = vrot.lane.b32.xlu2 %v994_v59, %s1536_s11 }
 0x863   :  { %v1023_v63 = vpop.permute.xlu2 %1022 }
 0x864   :  { %v1025_v0 = vadd.f32 %v1023_v63, %v2181_v37 }
 0x866   :  { %v1444_v1 = vmul.f32 -1.442695, %v1025_v0 }
 0x868   :  { %1519 = vpow2.f32 %v1444_v1 }
 0x86b   :  { %v1046_v16 = vpop.permute.xlu2 %1045 }
 0x86e   :  { %v1520_v2 = vpop.eup %1519 }
 0x86f   :  { %v1029_v3 = vadd.f32 1.0, %v1520_v2 }
 0x871   :  { %1521 = vrcp.f32 %v1029_v3  ;;  %v1041_v7 = vand.u32 2147483648, %v1029_v3  ;;  %v1039_v10 = vand.u32 2147483647, %v1029_v3  ;;  %vm1035_vm7 = vweird.f32 %v1029_v3 }
 0x873   :  { %v1042_v12 = vor.u32 1.1754944e-38, %v1041_v7  ;;  %vm1040_vm9 = vcmp.eq.f32.partialorder %v1039_v10, 8.507059e+37  ;;  %v1062_v24 = vpop.permute.xlu2 %1061 }
 0x877   :  { %v1522_v4 = vpop.eup %1521 }
 0x878   :  { %v1031_v5 = vmul.f32 %v1522_v4, %v1029_v3  ;;  %vm1036_vm6 = vweird.f32 %v1522_v4 }
 0x879   :  { %vm1037_vm8 = vmor %vm1035_vm7, %vm1036_vm6 }
 0x87a   :  { %v1032_v6 = vsub.f32 1.0, %v1031_v5 }
 0x87c   :  { %v1033_v9 = vmul.f32 %v1522_v4, %v1032_v6 }
 0x87e   :  { %v1034_v11 = vadd.f32 %v1522_v4, %v1033_v9 }
 0x880   :  { %v1038_v13 = vsel %vm1037_vm8, %v1522_v4, %v1034_v11 }
 0x881   :  { %v1043_v14 = vsel %vm1040_vm9, %v1042_v12, %v1038_v13 }
 0x882   :  { %v1048_v17 = vmul.f32 %v1046_v16, %v1043_v14  ;;  %v1055_v23 = vsub.f32 1.0, %v1043_v14  ;;  %v1064_v26 = vmul.f32 %v1062_v24, %v1043_v14 }
 0x884   :  { %1050 = vrot.lane.b32.xlu0 %v1048_v17, %s1534_s13 }
 0x8f6   :  { %v1051_v18 = vpop.permute.xlu0 %1050 }
 0x8f7   :  { %v1053_v19 = vadd.f32 %v1051_v18, %v2181_v37 }
 0x8f9   :  { %1523 = vtanh.f32 %v1053_v19 }
 0x8ff   :  { %v1524_v20 = vpop.eup %1523 }
 0x900   :  { %1057 = vrot.lane.b32.xlu1 %v1524_v20, %s1535_s15 }
 0x972   :  { %v1058_v25 = vpop.permute.xlu1 %1057 }
 0x973   :  { %v1060_v27 = vmul.f32 %v1058_v25, %v1055_v23 }
 0x975   :  { %v1065_v28 = vadd.f32 %v1064_v26, %v1060_v27 }
 0x977   :  { %1069 = vrot.lane.b32.xlu0 %v1065_v28, %s1538_s29 }
 0x9e9   :  { %v1070_v33 = vpop.permute.xlu0 %1069 }
 0x9ea   :  { %1445 = vmatmul.msk.f32.vlgmr.msra.gmra.mxu3 %vm998_vm5, %v1070_v33 }
 0xa6d   :  { %v1090_v34 = vpop.f32.mrf.mxu3 }
 0xa6e   :  { %1446 = vmatmul.msk.f32.vlgmr.msra.gmra.mxu0 %vm829_vm13, %v1090_v34 }
 0xaeb   :  { %v1117_v35 = vpop.f32.mrf.mxu0 }
 0xaec   :  { %v1120_v36 = vmul.f32 0.35355338, %v1117_v35 }
 0xaee   :  { %v1122_v37 = vsel %vm1121_vm10, %v1120_v36, -inf }
 0xaef   :  { %1123 = vmax.xlane.f32.xlu1 %v1122_v37 }
 0xb62   :  { %v1124_v41 = vpop.xlane.xlu1 %1123 }
 0xb63   :  { %v1125_v42 = vsub.f32 %v1120_v36, %v1124_v41 }
 0xb65   :  { %v1126_v43 = vmul.f32 1.442695, %v1125_v42 }
 0xb67   :  { %1525 = vpow2.f32 %v1126_v43 }
 0xb6d   :  { %v1526_v45 = vpop.eup %1525 }
 0xb6e   :  { %1447 = vmatmul.msk.f32.vlgmr.msra.gmra.mxu1 %vm1133_vm11, %v1526_v45 }
 0xbeb   :  { %v1154_v54 = vpop.f32.mrf.mxu1 }
 0xbec   :  { %1527 = vrcp.f32 %v1154_v54 }
 0xbf2   :  { %v1528_v55 = vpop.eup %1527 }
 0xbf3   :  { %v1158_v56 = vmul.f32 %v1528_v55, %v1526_v45 }
 0xbf5   :  { %1448 = vmatmul.msk.f32.vlgmr.msrb.gmra.mxu2 %vm1133_vm11, %v1158_v56 }
 0xc78   :  { %v1184_v57 = vpop.f32.mrf.mxu2 }
 0xc79   :  { %1449 = vmatmul.msk.f32.vlgmr.msrb.gmra.mxu3 %vm829_vm13, %v1184_v57 }
 0xcfc   :  { %v1215_v59 = vpop.f32.mrf.mxu3 }
 0xcfd   :  { %v1216_v60 = vadd.f32 %v1506_v58, %v1215_v59 }
 0xcff   :  { %v1219_v61 = vsel %vm1218_vm12, %v1216_v60, -inf }
 0xd00   :  { %1220 = vmax.xlane.f32.xlu2 %v1219_v61 }
 0xd73   :  { %v1221_v62 = vpop.xlane.xlu2 %1220 }
 0xd74   :  { %v1222_v63 = vsub.f32 %v1216_v60, %v1221_v62 }
 0xd76   :  { %v1223_v0 = vmul.f32 1.442695, %v1222_v63 }
 0xd78   :  { %1529 = vpow2.f32 %v1223_v0 }
 0xd7e   :  { %v1530_v1 = vpop.eup %1529 }
 0xd7f   :  { %v1225_v2 = vsel %vm1218_vm12, %v1530_v1, 0.0 }
 0xd80   :  { %1226 = vadd.xlane.f32.xlu0 %v1225_v2 }
 0xdf3   :  { %v1227_v3 = vpop.xlane.xlu0 %1226 }
 0xdf4   :  { %1531 = vrcp.f32 %v1227_v3 }
 0xdfa   :  { %v1532_v4 = vpop.eup %1531 }
 0xdfb   :  { %v1229_v5 = vmul.f32 %v1532_v4, %v1530_v1 }
 0xdfd   :  { %1231 = vrot.lane.b32.xlu2 %v1229_v5, %s1534_s13 }
 0xe57   :  { %v1232_v6 = vpop.permute.xlu2 %1231 }
 0xe58   :  { %v1234_v7 = vsel %vm829_vm13, %v1184_v57, %v1232_v6 }
 0xe59   :  { %v1236_v9 = vsel %vm1235_vm14, %v1234_v7, 0.0 }
 0xe5a   :  { %1237 = vst [vmem:[%s2295_s23] sm:$0x3] %v1236_v9 }

</bundles_post_ra>
